<compile_context>
chip_gen: v6e
topology: v6e:2x2x1
jax: 0.10.0
libtpu: 0.0.40
codegen_flags: <defaults>
</compile_context>

<pallas_src>
import numpy as np
import jax
import jax.numpy as jnp
from jax.experimental import pallas as pl
from jax.experimental.pallas import tpu as pltpu


# ----------------------------------------------------------------------------
# Kernel
# ----------------------------------------------------------------------------
def _make_rga_kernel(G, C, P, ic, isp, ns_d, nc_d, w_off, s_off):
    """RGA kernel for one lane-packed (C, G*P) block.

    ic  = inter_channel, isp = inter_spatial, ns_d/nc_d = W_spatial/W_channel hidden.
    """
    f32 = jnp.float32
    o_ws, o_ggs, o_wc, o_ggc = w_off
    (o_bs, o_bggs, o_ws1, o_bws1, o_ws2,
     o_bc, o_bggc, o_wc1, o_bwc1, o_wc2) = s_off

    def nt_dot(a, b):  # a @ b.T (transpose folded into contraction dims)
        return jax.lax.dot_general(a, b, (((1,), (1,)), ((), ())),
                                   preferred_element_type=f32)

    def tn_dot(a, b):  # a.T @ b
        return jax.lax.dot_general(a, b, (((0,), (0,)), ((), ())),
                                   preferred_element_type=f32)

    def kernel(x_ref, w_ref, s_ref, scal_ref, out_ref):
        cd = w_ref.dtype  # MXU operand dtype (bf16 by default)

        # ---- static, sublane-aligned slices of the two parameter slabs ----
        w_s = w_ref[o_ws:o_ws + 3 * ic, :C]            # stacked theta/phi/gx (spatial)
        wggs_lr = w_ref[o_ggs:o_ggs + 2 * isp, :P]     # gg_spatial halves [left; right]
        w_c = w_ref[o_wc:o_wc + 3 * isp, :P]           # stacked theta/phi/gx (channel)
        wggc_lr = w_ref[o_ggc:o_ggc + 2 * ic, :C]      # gg_channel halves [left; right]

        b_s = s_ref[o_bs:o_bs + 3 * ic, 0:1]           # (3ic, 1)
        b_ggs = s_ref[o_bggs:o_bggs + isp, 0:1]        # (isp, 1)
        w_ws1t = s_ref[o_ws1:o_ws1 + 1 + isp, 0:ns_d]  # W_spatial[0].T  (1+isp, ns_d)
        b_ws1 = s_ref[o_bws1:o_bws1 + ns_d, 0:1]       # (ns_d, 1)
        w_ws2t = s_ref[o_ws2:o_ws2 + ns_d, 0:1]        # W_spatial[1].T  (ns_d, 1)
        b_c = s_ref[o_bc:o_bc + 1, 0:3 * isp]          # channel conv bias as a row
        b_ggc = s_ref[o_bggc:o_bggc + 1, 0:ic]         # (1, ic)
        w_wc1 = s_ref[o_wc1:o_wc1 + nc_d, 0:1 + ic]    # W_channel[0]    (nc_d, 1+ic)
        b_wc1 = s_ref[o_bwc1:o_bwc1 + 1, 0:nc_d]       # (1, nc_d)
        w_wc2 = s_ref[o_wc2:o_wc2 + 1, 0:nc_d]         # W_channel[1]    (1, nc_d)
        b_ws2 = scal_ref[0]                            # (1,1) BN scalars -> SMEM
        b_wc2 = scal_ref[1]

        x = x_ref[0].astype(f32)                       # (C, G*P); residual path stays f32
        x_cd = x.astype(cd)

        # ---------------- spatial attention ----------------
        # theta/phi/gx 1x1 convs fused into ONE lane-dense matmul over all G images.
        hs = jnp.maximum(jnp.dot(w_s, x_cd, preferred_element_type=f32) + b_s, 0.0)
        g_mean = jnp.mean(hs[2 * ic:3 * ic], axis=0, keepdims=True)    # (1, G*P)

        att_s = []
        for g in range(G):  # tiny per-image pieces; G <= 2, live values ~1 vreg each
            sl = slice(g * P, (g + 1) * P)
            tp = hs[0:2 * ic, sl].astype(cd)           # [theta_s; phi_s]   (2ic, P)
            # Re-associated gg_spatial:  wggs_l@Gs.T + wggs_r@Gs, Gs = theta.T@phi
            #   == (wggs_l@phi.T)@theta + (wggs_r@theta.T)@phi.
            # No (P, P) Gram; both rank-ic products come out of ONE MXU call.
            m = nt_dot(wggs_lr, tp)                    # (2isp, 2ic)
            a = jnp.concatenate([m[0:isp, ic:2 * ic],          # wggs_l @ phi.T
                                 m[isp:2 * isp, 0:ic]], 1)     # wggs_r @ theta.T
            gs_joint = jnp.maximum(
                jnp.dot(a.astype(cd), tp, preferred_element_type=f32) + b_ggs, 0.0)
            gm = g_mean[:, sl]                         # (1, P)
            # W_spatial[0]: ns_d == 1 -> VPU multiply + sublane reduce (no MXU).
            if ns_d == 1:
                h1 = jnp.maximum(
                    w_ws1t[0:1, 0:1] * gm
                    + jnp.sum(w_ws1t[1:1 + isp, 0:1] * gs_joint, axis=0, keepdims=True)
                    + b_ws1, 0.0)                      # (1, P)
            else:
                ys = jnp.concatenate([gm, gs_joint], axis=0)
                h1 = jnp.maximum(tn_dot(w_ws1t, ys) + b_ws1, 0.0)     # (ns_d, P)
            # W_spatial[1]: M = 1 product stays on the VPU (weighted sublane reduce).
            w_ys = jnp.sum(w_ws2t * h1, axis=0, keepdims=True) + b_ws2
            att_s.append(jax.nn.sigmoid(w_ys))
        att_s = att_s[0] if G == 1 else jnp.concatenate(att_s, axis=1)  # (1, G*P)

        x2 = att_s * x                                  # full-lane VPU, f32
        x2_cd = x2.astype(cd)

        # ---------------- channel attention (transposed orientation) ----------------
        # Everything is carried as (C, small) so the per-channel attention ends up as
        # a (C, 1) column directly -> no relayout before the final multiply.
        out_parts = []
        for g in range(G):
            sl = slice(g * P, (g + 1) * P)
            x2g = x2_cd[:, sl]                          # (C, P)
            # hc.T = relu(x2 @ w_c.T + b_c): contracts x2 over pixels, no x2.T built.
            hct = jnp.maximum(nt_dot(x2g, w_c) + b_c, 0.0)            # (C, 3isp)
            gcmt = jnp.mean(hct[:, 2 * isp:3 * isp], axis=1, keepdims=True)  # (C, 1)
            tpct = hct[:, 0:2 * isp].astype(cd)         # [theta_c.T | phi_c.T] (C, 2isp)
            # Re-associated gg_channel (one batched MXU call for both rank-isp pieces).
            mc = jnp.dot(wggc_lr, tpct, preferred_element_type=f32)   # (2ic, 2isp)
            bm = jnp.concatenate([mc[0:ic, isp:2 * isp],              # wggc_l @ phi_c.T
                                  mc[ic:2 * ic, 0:isp]], 1)           # wggc_r @ theta_c.T
            gc_jt = jnp.maximum(nt_dot(tpct, bm.astype(cd)) + b_ggc, 0.0)  # (C, ic)
            # W_channel[0]: nc_d == 1 -> VPU multiply + lane reduce.
            if nc_d == 1:
                h1ct = jnp.maximum(
                    w_wc1[0:1, 0:1] * gcmt
                    + jnp.sum(w_wc1[0:1, 1:1 + ic] * gc_jt, axis=1, keepdims=True)
                    + b_wc1[0:1, 0:1], 0.0)             # (C, 1)
                w_yct = w_wc2[0:1, 0:1] * h1ct + b_wc2  # (C, 1)
            else:
                h1ct = jnp.maximum(nt_dot(gcmt, w_wc1[:, 0:1])
                                   + nt_dot(gc_jt, w_wc1[:, 1:1 + ic])
                                   + b_wc1, 0.0)        # (C, nc_d)
                w_yct = nt_dot(h1ct, w_wc2) + b_wc2     # (C, 1)
            att_col = jax.nn.sigmoid(w_yct)             # (C, 1), per-channel attention
            out_parts.append(att_col * x2[:, sl])       # (C, P), f32
        out = out_parts[0] if G == 1 else jnp.concatenate(out_parts, axis=1)
        out_ref[0] = out.astype(out_ref.dtype)          # single lane-dense store

    return kernel


# ----------------------------------------------------------------------------
# Parameter construction / packing
# ----------------------------------------------------------------------------
def fold_bn_into_conv(key, out_ch, in_ch, eps=1e-5):
    """1x1 conv (no bias) + BatchNorm (inference) folded into W_eff, b_eff."""
    kw, kg, kb, km, kv = jax.random.split(key, 5)
    w = jax.random.normal(kw, (out_ch, in_ch), jnp.float32) / np.sqrt(in_ch)
    gamma = 1.0 + 0.1 * jax.random.normal(kg, (out_ch,), jnp.float32)
    beta = 0.1 * jax.random.normal(kb, (out_ch,), jnp.float32)
    mean = 0.1 * jax.random.normal(km, (out_ch,), jnp.float32)
    var = 1.0 + 0.1 * jnp.abs(jax.random.normal(kv, (out_ch,), jnp.float32))
    scale = gamma / jnp.sqrt(var + eps)
    w_eff = w * scale[:, None]
    b_eff = (beta - scale * mean)[:, None]      # (out_ch, 1)
    return w_eff, b_eff


def make_params(key, in_channel, in_spatial, cha_ratio=8, spa_ratio=8, down_ratio=8):
    # TODO(synk): BatchNorm is implemented in inference mode (folded running stats);
    # PyTorch training-mode batch statistics are not reproduced.
    ic = in_channel // cha_ratio
    isp = in_spatial // spa_ratio
    ns, nc = 1 + isp, 1 + ic
    ns_d, nc_d = ns // down_ratio, nc // down_ratio
    keys = jax.random.split(key, 12)
    params = []
    params += list(fold_bn_into_conv(keys[0], ic, in_channel))        # theta_spatial
    params += list(fold_bn_into_conv(keys[1], ic, in_channel))        # phi_spatial
    params += list(fold_bn_into_conv(keys[2], ic, in_channel))        # gx_spatial
    params += list(fold_bn_into_conv(keys[3], isp, in_spatial * 2))   # gg_spatial
    params += list(fold_bn_into_conv(keys[4], ns_d, ns))              # W_spatial[0]
    params += list(fold_bn_into_conv(keys[5], 1, ns_d))               # W_spatial[1]
    params += list(fold_bn_into_conv(keys[6], isp, in_spatial))       # theta_channel
    params += list(fold_bn_into_conv(keys[7], isp, in_spatial))       # phi_channel
    params += list(fold_bn_into_conv(keys[8], isp, in_spatial))       # gx_channel
    params += list(fold_bn_into_conv(keys[9], ic, in_channel * 2))    # gg_channel
    params += list(fold_bn_into_conv(keys[10], nc_d, nc))             # W_channel[0]
    params += list(fold_bn_into_conv(keys[11], 1, nc_d))              # W_channel[1]
    return params


def _align8(n):
    return ((n + 7) // 8) * 8


def _stack_rows(sections):
    """Stack 2-D f32 sections along sublanes at 8-aligned row offsets (zero padded)."""
    lane = max(int(s.shape[1]) for s in sections)
    offs, row = [], 0
    for s in sections:
        start = _align8(row)
        offs.append(start)
        row = start + int(s.shape[0])
    slab = np.zeros((_align8(row), lane), np.float32)
    for off, s in zip(offs, sections):
        slab[off:off + s.shape[0], :s.shape[1]] = np.asarray(s, np.float32)
    return slab, tuple(offs)


def pack_params(params, compute_dtype=jnp.bfloat16):
    """Consolidate the 24 folded conv params into:
       * one MXU-operand weight slab (compute_dtype),
       * one f32 slab with biases + the tiny W_spatial/W_channel weights,
       * a (2,) f32 SMEM scalar array for the two (1,1) BN biases.
    """
    (w_ths, b_ths, w_phs, b_phs, w_gxs, b_gxs, w_ggs, b_ggs,
     w_ws1, b_ws1, w_ws2, b_ws2,
     w_thc, b_thc, w_phc, b_phc, w_gxc, b_gxc, w_ggc, b_ggc,
     w_wc1, b_wc1, w_wc2, b_wc2) = params
    f = lambda a: np.asarray(a, np.float32)
    ic, C = w_ths.shape
    isp, P = w_thc.shape
    ns_d = w_ws1.shape[0]
    nc_d = w_wc1.shape[0]

    w_sections = [
        np.concatenate([f(w_ths), f(w_phs), f(w_gxs)], 0),          # (3ic, C)
        np.concatenate([f(w_ggs)[:, :P], f(w_ggs)[:, P:]], 0),      # (2isp, P) [l; r]
        np.concatenate([f(w_thc), f(w_phc), f(w_gxc)], 0),          # (3isp, P)
        np.concatenate([f(w_ggc)[:, :C], f(w_ggc)[:, C:]], 0),      # (2ic, C) [l; r]
    ]
    w_slab, w_off = _stack_rows(w_sections)

    s_sections = [
        np.concatenate([f(b_ths), f(b_phs), f(b_gxs)], 0),          # (3ic, 1)
        f(b_ggs),                                                   # (isp, 1)
        f(w_ws1).T,                                                 # (1+isp, ns_d)
        f(b_ws1),                                                   # (ns_d, 1)
        f(w_ws2).T,                                                 # (ns_d, 1)
        np.concatenate([f(b_thc), f(b_phc), f(b_gxc)], 0).T,        # (1, 3isp) row
        f(b_ggc).T,                                                 # (1, ic) row
        f(w_wc1),                                                   # (nc_d, 1+ic)
        f(b_wc1).T,                                                 # (1, nc_d) row
        f(w_wc2),                                                   # (1, nc_d)
    ]
    s_slab, s_off = _stack_rows(s_sections)

    scal = np.array([float(f(b_ws2).reshape(())), float(f(b_wc2).reshape(()))],
                    np.float32)
    dims = dict(C=C, P=P, ic=ic, isp=isp, ns_d=ns_d, nc_d=nc_d)
    return (jnp.asarray(w_slab, compute_dtype), jnp.asarray(s_slab, jnp.float32),
            jnp.asarray(scal), w_off, s_off, dims)


# ----------------------------------------------------------------------------
# Wrapper
# ----------------------------------------------------------------------------
def rga_forward(x, params, *, compute_dtype=jnp.bfloat16, out_dtype=None,
                lane_pack=None):
    """RGA forward pass via one pallas_call.

    compute_dtype: MXU operand dtype (bf16 is MXU-native on v5e/v6e/v7x); accumulation,
      biases and all elementwise math stay f32, and x stays f32 in HBM.
    out_dtype: output dtype (defaults to x.dtype); pass bf16 to halve write-back HBM.
    lane_pack: images packed along the lane (last) axis per grid step.  Default packs
      up to ceil(128/P) images so vregs and the output store are lane-dense.
      NOTE(v7x): with very small batches, lane_pack=1 instead yields >= 2 "parallel"
      grid steps so both TensorCores get work.
    """
    b, c, h, w = x.shape
    p = h * w
    out_dtype = x.dtype if out_dtype is None else out_dtype

    w_slab, s_slab, scal, w_off, s_off, dims = pack_params(params, compute_dtype)
    C, P, ic, isp, ns_d, nc_d = (dims[k] for k in ("C", "P", "ic", "isp", "ns_d", "nc_d"))
    assert (C, P) == (c, p), "parameter shapes do not match the input"

    if lane_pack is None:
        G = max(1, min(b, -(-128 // p)))     # reach >= 128 lanes if the batch allows
        while b % G:
            G -= 1
    else:
        G = int(lane_pack)
        assert G >= 1 and b % G == 0, "lane_pack must divide the batch"
    nb = b // G

    # Lane-dense packing (pure layout plumbing done by XLA outside the kernel).
    x_p = (x.astype(jnp.float32)
           .reshape(nb, G, c, p).transpose(0, 2, 1, 3).reshape(nb, c, G * p))

    flops_img = (2 * (3 * ic) * C * P                       # fused spatial convs
                 + 2 * (2 * isp) * (2 * ic) * P             # batched gg_spatial stage 1
                 + 2 * isp * (2 * ic) * P                   # gg_spatial stage 2
                 + 2 * ns_d * (1 + isp) * P + 2 * ns_d * P  # W_spatial
                 + 2 * C * P                                # attention multiplies
                 + 2 * (3 * isp) * P * C                    # channel convs
                 + 2 * (2 * ic) * (2 * isp) * C             # batched gg_channel stage 1
                 + 2 * ic * (2 * isp) * C                   # gg_channel stage 2
                 + 2 * nc_d * (1 + ic) * C + 2 * nc_d * C)  # W_channel
    cost = pl.CostEstimate(
        flops=int(b * flops_img),
        transcendentals=int(b * (P + C)),
        bytes_accessed=int(x_p.size * 4 + b * c * p * jnp.dtype(out_dtype).itemsize
                           + w_slab.size * w_slab.dtype.itemsize + s_slab.size * 4),
    )

    kernel = _make_rga_kernel(G, C, P, ic, isp, ns_d, nc_d, w_off, s_off)
    out_p = pl.pallas_call(
        kernel,
        out_shape=jax.ShapeDtypeStruct((nb, c, G * p), out_dtype),
        grid=(nb,),
        in_specs=[
            pl.BlockSpec((1, c, G * p), lambda i: (i, 0, 0)),
            pl.BlockSpec(w_slab.shape, lambda i: (0, 0)),
            pl.BlockSpec(s_slab.shape, lambda i: (0, 0)),
            pl.BlockSpec(memory_space=pltpu.MemorySpace.SMEM),
        ],
        out_specs=pl.BlockSpec((1, c, G * p), lambda i: (i, 0, 0)),
        compiler_params=pltpu.CompilerParams(dimension_semantics=("parallel",)),
        cost_estimate=cost,
    )(x_p, w_slab, s_slab, scal)

    out = out_p.reshape(nb, c, G, p).transpose(0, 2, 1, 3).reshape(b, c, h, w)
    return out


# ----------------------------------------------------------------------------
# Pure-JAX reference (mirrors the PyTorch forward, using the raw folded params)
# ----------------------------------------------------------------------------
def rga_reference(x, params):
    (w_ths, b_ths, w_phs, b_phs, w_gxs, b_gxs, w_ggs, b_ggs,
     w_ws1, b_ws1, w_ws2, b_ws2,
     w_thc, b_thc, w_phc, b_phc, w_gxc, b_gxc, w_ggc, b_ggc,
     w_wc1, b_wc1, w_wc2, b_wc2) = params
    b, c, h, w = x.shape
    hw = h * w

    def cbr(W, bb, X):
        return jnp.maximum(W @ X + bb, 0.0)

    def one(xb):
        X = xb.reshape(c, hw)
        theta = cbr(w_ths, b_ths, X)
        phi = cbr(w_phs, b_phs, X)
        Gs = theta.T @ phi
        Gs_joint = jnp.maximum(w_ggs @ jnp.concatenate([Gs.T, Gs], 0) + b_ggs, 0.0)
        gm = jnp.mean(cbr(w_gxs, b_gxs, X), axis=0, keepdims=True)
        ys = jnp.concatenate([gm, Gs_joint], 0)
        h1 = jnp.maximum(w_ws1 @ ys + b_ws1, 0.0)
        w_ys = w_ws2 @ h1 + b_ws2
        x2 = jax.nn.sigmoid(w_ys) * X
        xc = x2.T
        tc = cbr(w_thc, b_thc, xc)
        pc = cbr(w_phc, b_phc, xc)
        Gc = tc.T @ pc
        Gc_joint = jnp.maximum(w_ggc @ jnp.concatenate([Gc.T, Gc], 0) + b_ggc, 0.0)
        gcm = jnp.mean(cbr(w_gxc, b_gxc, xc), axis=0, keepdims=True)
        yc = jnp.concatenate([gcm, Gc_joint], 0)
        h1c = jnp.maximum(w_wc1 @ yc + b_wc1, 0.0)
        w_yc = w_wc2 @ h1c + b_wc2
        out = jax.nn.sigmoid(w_yc).T * x2
        return out.reshape(c, h, w)

    return jax.vmap(one)(x)


if __name__ == "__main__":
    # in_channel=64, in_spatial=H*W=64 -> inter_channel=inter_spatial=8, ns_d=nc_d=1
    B, C, H, W = 2, 64, 8, 8
    key = jax.random.PRNGKey(0)
    kx, kp = jax.random.split(key)
    x = jax.random.normal(kx, (B, C, H, W), jnp.float32)
    params = make_params(kp, in_channel=C, in_spatial=H * W)

    with jax.default_matmul_precision("highest"):
        ref = jax.block_until_ready(rga_reference(x, params))
    scale = float(jnp.max(jnp.abs(ref))) + 1e-6
    tol_max = 0.15 * scale + 0.03      # robust to bf16-MXU operand rounding on TPU
    tol_mean = 0.02 * scale + 3e-3

    def check(out):
        assert out.shape == (B, C, H, W)
        assert bool(jnp.isfinite(out).all())
        d = jnp.abs(out.astype(jnp.float32) - ref)
        emax, emean = float(jnp.max(d)), float(jnp.mean(d))
        assert emax <= tol_max, f"max abs err {emax} > {tol_max}"
        assert emean <= tol_mean, f"mean abs err {emean} > {tol_mean}"

    # Default: bf16 MXU operands, two images lane-packed -> 128-wide vregs / stores.
    out = jax.block_until_ready(rga_forward(x, params))
    check(out)

    # f32 MXU operands (checks the re-associated algebra independent of bf16 rounding).
    out_f32 = jax.block_until_ready(rga_forward(x, params, compute_dtype=jnp.float32))
    check(out_f32)

    # lane_pack=1: one image per "parallel" grid step (keeps both v7x TensorCores busy).
    out_mc = jax.block_until_ready(rga_forward(x, params, lane_pack=1))
    check(out_mc)

    print("KERNEL_OK")
</pallas_src>

<mosaic_0001>
module attributes {stable_mosaic.version = 11 : i64} {
  func.func @kernel(%arg0: i32, %arg1: memref<1x64x128xf32, #tpu.memory_space<vmem>>, %arg2: memref<80x64xbf16, #tpu.memory_space<vmem>>, %arg3: memref<104x24xf32, #tpu.memory_space<vmem>>, %arg4: memref<2xf32, #tpu.memory_space<smem>>, %arg5: memref<1x64x128xf32, #tpu.memory_space<vmem>>) attributes {dimension_semantics = [#tpu.dimension_semantics<parallel>], iteration_bounds = array<i64: 1>, scalar_prefetch = 0 : i64, scratch_operands = 0 : i64, tpu.core_type = #tpu.core_type<tc>, window_params = [{transform_indices = @transform_0, window_bounds = array<i64: 1, 64, 128>}, {pipeline_mode = #tpu.pipeline_mode<synchronous>, transform_indices = @transform_1, window_bounds = array<i64: 80, 64>}, {pipeline_mode = #tpu.pipeline_mode<synchronous>, transform_indices = @transform_2, window_bounds = array<i64: 104, 24>}, {transform_indices = @transform_3, window_bounds = array<i64: 2>}, {transform_indices = @transform_4, window_bounds = array<i64: 1, 64, 128>}]} {
    %c0 = arith.constant 0 : index
    %c0_0 = arith.constant 0 : index
    %0 = vector.load %arg2[%c0, %c0_0] : memref<80x64xbf16, #tpu.memory_space<vmem>>, vector<24x64xbf16>
    %c24 = arith.constant 24 : index
    %c0_1 = arith.constant 0 : index
    %1 = vector.load %arg2[%c24, %c0_1] : memref<80x64xbf16, #tpu.memory_space<vmem>>, vector<16x64xbf16>
    %c40 = arith.constant 40 : index
    %c0_2 = arith.constant 0 : index
    %2 = vector.load %arg2[%c40, %c0_2] : memref<80x64xbf16, #tpu.memory_space<vmem>>, vector<24x64xbf16>
    %c64 = arith.constant 64 : index
    %c0_3 = arith.constant 0 : index
    %3 = vector.load %arg2[%c64, %c0_3] : memref<80x64xbf16, #tpu.memory_space<vmem>>, vector<16x64xbf16>
    %c0_4 = arith.constant 0 : index
    %c0_5 = arith.constant 0 : index
    %4 = vector.load %arg3[%c0_4, %c0_5] : memref<104x24xf32, #tpu.memory_space<vmem>>, vector<24x1xf32>
    %c24_6 = arith.constant 24 : index
    %c0_7 = arith.constant 0 : index
    %5 = vector.load %arg3[%c24_6, %c0_7] : memref<104x24xf32, #tpu.memory_space<vmem>>, vector<8x1xf32>
    %c32 = arith.constant 32 : index
    %c0_8 = arith.constant 0 : index
    %6 = vector.load %arg3[%c32, %c0_8] : memref<104x24xf32, #tpu.memory_space<vmem>>, vector<9x1xf32>
    %c48 = arith.constant 48 : index
    %c0_9 = arith.constant 0 : index
    %7 = vector.load %arg3[%c48, %c0_9] : memref<104x24xf32, #tpu.memory_space<vmem>>, vector<1x1xf32>
    %c56 = arith.constant 56 : index
    %c0_10 = arith.constant 0 : index
    %8 = vector.load %arg3[%c56, %c0_10] : memref<104x24xf32, #tpu.memory_space<vmem>>, vector<1x1xf32>
    %c64_11 = arith.constant 64 : index
    %c0_12 = arith.constant 0 : index
    %9 = vector.load %arg3[%c64_11, %c0_12] : memref<104x24xf32, #tpu.memory_space<vmem>>, vector<1x24xf32>
    %c72 = arith.constant 72 : index
    %c0_13 = arith.constant 0 : index
    %10 = vector.load %arg3[%c72, %c0_13] : memref<104x24xf32, #tpu.memory_space<vmem>>, vector<1x8xf32>
    %c80 = arith.constant 80 : index
    %c0_14 = arith.constant 0 : index
    %11 = vector.load %arg3[%c80, %c0_14] : memref<104x24xf32, #tpu.memory_space<vmem>>, vector<1x9xf32>
    %c88 = arith.constant 88 : index
    %c0_15 = arith.constant 0 : index
    %12 = vector.load %arg3[%c88, %c0_15] : memref<104x24xf32, #tpu.memory_space<vmem>>, vector<1x1xf32>
    %c96 = arith.constant 96 : index
    %c0_16 = arith.constant 0 : index
    %13 = vector.load %arg3[%c96, %c0_16] : memref<104x24xf32, #tpu.memory_space<vmem>>, vector<1x1xf32>
    %c0_17 = arith.constant 0 : index
    %14 = memref.load %arg4[%c0_17] : memref<2xf32, #tpu.memory_space<smem>>
    %c1 = arith.constant 1 : index
    %15 = memref.load %arg4[%c1] : memref<2xf32, #tpu.memory_space<smem>>
    %c0_18 = arith.constant 0 : index
    %c0_19 = arith.constant 0 : index
    %c0_20 = arith.constant 0 : index
    %16 = vector.load %arg1[%c0_18, %c0_19, %c0_20] : memref<1x64x128xf32, #tpu.memory_space<vmem>>, vector<1x64x128xf32>
    %17 = vector.shape_cast %16 : vector<1x64x128xf32> to vector<64x128xf32>
    %18 = arith.truncf %17 : vector<64x128xf32> to vector<64x128xbf16>
    %cst = arith.constant dense<0.000000e+00> : vector<24x128xf32>
    %19 = tpu.matmul %0, %18, %cst {dimension_numbers = #tpu.dot_dimension_numbers<[1], [0], [0], [1], [0, 0, 1, 1], [], []>} : vector<24x64xbf16>, vector<64x128xbf16>, vector<24x128xf32> -> vector<24x128xf32>
    %20 = vector.broadcast %4 : vector<24x1xf32> to vector<24x128xf32>
    %21 = arith.addf %19, %20 : vector<24x128xf32>
    %cst_21 = arith.constant 0.000000e+00 : f32
    %22 = vector.broadcast %cst_21 : f32 to vector<24x128xf32>
    %23 = arith.maximumf %21, %22 : vector<24x128xf32>
    %24 = vector.extract_strided_slice %23 {offsets = [16, 0], sizes = [8, 128], strides = [1, 1]} : vector<24x128xf32> to vector<8x128xf32>
    %cst_22 = arith.constant dense<0.000000e+00> : vector<128xf32>
    %25 = vector.multi_reduction <add>, %24, %cst_22 [0] : vector<8x128xf32> to vector<128xf32>
    %26 = vector.shape_cast %25 : vector<128xf32> to vector<1x128xf32>
    %cst_23 = arith.constant 8.000000e+00 : f32
    %27 = vector.broadcast %cst_23 : f32 to vector<1x128xf32>
    %28 = arith.divf %26, %27 : vector<1x128xf32>
    %29 = vector.extract_strided_slice %23 {offsets = [0, 0], sizes = [16, 64], strides = [1, 1]} : vector<24x128xf32> to vector<16x64xf32>
    %30 = arith.truncf %29 : vector<16x64xf32> to vector<16x64xbf16>
    %cst_24 = arith.constant dense<0.000000e+00> : vector<16x16xf32>
    %31 = tpu.matmul %1, %30, %cst_24 {dimension_numbers = #tpu.dot_dimension_numbers<[1], [1], [0], [0], [0, 0, 1, 0], [], []>} : vector<16x64xbf16>, vector<16x64xbf16>, vector<16x16xf32> -> vector<16x16xf32>
    %32 = vector.extract_strided_slice %31 {offsets = [0, 8], sizes = [8, 8], strides = [1, 1]} : vector<16x16xf32> to vector<8x8xf32>
    %33 = vector.extract_strided_slice %31 {offsets = [8, 0], sizes = [8, 8], strides = [1, 1]} : vector<16x16xf32> to vector<8x8xf32>
    %34 = tpu.concatenate %32, %33 in 1 : vector<8x8xf32>, vector<8x8xf32> -> vector<8x16xf32>
    %35 = arith.truncf %34 : vector<8x16xf32> to vector<8x16xbf16>
    %cst_25 = arith.constant dense<0.000000e+00> : vector<8x64xf32>
    %36 = tpu.matmul %35, %30, %cst_25 {dimension_numbers = #tpu.dot_dimension_numbers<[1], [0], [0], [1], [0, 0, 1, 1], [], []>} : vector<8x16xbf16>, vector<16x64xbf16>, vector<8x64xf32> -> vector<8x64xf32>
    %37 = vector.broadcast %5 : vector<8x1xf32> to vector<8x64xf32>
    %38 = arith.addf %36, %37 : vector<8x64xf32>
    %cst_26 = arith.constant 0.000000e+00 : f32
    %39 = vector.broadcast %cst_26 : f32 to vector<8x64xf32>
    %40 = arith.maximumf %38, %39 : vector<8x64xf32>
    %41 = vector.extract_strided_slice %28 {offsets = [0, 0], sizes = [1, 64], strides = [1, 1]} : vector<1x128xf32> to vector<1x64xf32>
    %42 = vector.extract_strided_slice %6 {offsets = [0, 0], sizes = [1, 1], strides = [1, 1]} : vector<9x1xf32> to vector<1x1xf32>
    %43 = vector.broadcast %42 : vector<1x1xf32> to vector<1x64xf32>
    %44 = arith.mulf %43, %41 : vector<1x64xf32>
    %45 = vector.extract_strided_slice %6 {offsets = [1, 0], sizes = [8, 1], strides = [1, 1]} : vector<9x1xf32> to vector<8x1xf32>
    %46 = vector.broadcast %45 : vector<8x1xf32> to vector<8x64xf32>
    %47 = arith.mulf %46, %40 : vector<8x64xf32>
    %cst_27 = arith.constant dense<0.000000e+00> : vector<64xf32>
    %48 = vector.multi_reduction <add>, %47, %cst_27 [0] : vector<8x64xf32> to vector<64xf32>
    %49 = vector.shape_cast %48 : vector<64xf32> to vector<1x64xf32>
    %50 = arith.addf %44, %49 : vector<1x64xf32>
    %51 = vector.broadcast %7 : vector<1x1xf32> to vector<1x64xf32>
    %52 = arith.addf %50, %51 : vector<1x64xf32>
    %cst_28 = arith.constant 0.000000e+00 : f32
    %53 = vector.broadcast %cst_28 : f32 to vector<1x64xf32>
    %54 = arith.maximumf %52, %53 : vector<1x64xf32>
    %55 = vector.broadcast %8 : vector<1x1xf32> to vector<1x64xf32>
    %56 = arith.mulf %55, %54 : vector<1x64xf32>
    %cst_29 = arith.constant dense<0.000000e+00> : vector<64xf32>
    %57 = vector.multi_reduction <add>, %56, %cst_29 [0] : vector<1x64xf32> to vector<64xf32>
    %58 = vector.shape_cast %57 : vector<64xf32> to vector<1x64xf32>
    %59 = vector.broadcast %14 : f32 to vector<1x64xf32>
    %60 = arith.addf %58, %59 : vector<1x64xf32>
    %61 = arith.negf %60 : vector<1x64xf32>
    %62 = math.exp %61 : vector<1x64xf32>
    %cst_30 = arith.constant 1.000000e+00 : f32
    %63 = vector.broadcast %cst_30 : f32 to vector<1x64xf32>
    %64 = arith.addf %63, %62 : vector<1x64xf32>
    %65 = arith.divf %63, %64 : vector<1x64xf32>
    %66 = vector.extract_strided_slice %23 {offsets = [0, 64], sizes = [16, 64], strides = [1, 1]} : vector<24x128xf32> to vector<16x64xf32>
    %67 = arith.truncf %66 : vector<16x64xf32> to vector<16x64xbf16>
    %cst_31 = arith.constant dense<0.000000e+00> : vector<16x16xf32>
    %68 = tpu.matmul %1, %67, %cst_31 {dimension_numbers = #tpu.dot_dimension_numbers<[1], [1], [0], [0], [0, 0, 1, 0], [], []>} : vector<16x64xbf16>, vector<16x64xbf16>, vector<16x16xf32> -> vector<16x16xf32>
    %69 = vector.extract_strided_slice %68 {offsets = [0, 8], sizes = [8, 8], strides = [1, 1]} : vector<16x16xf32> to vector<8x8xf32>
    %70 = vector.extract_strided_slice %68 {offsets = [8, 0], sizes = [8, 8], strides = [1, 1]} : vector<16x16xf32> to vector<8x8xf32>
    %71 = tpu.concatenate %69, %70 in 1 : vector<8x8xf32>, vector<8x8xf32> -> vector<8x16xf32>
    %72 = arith.truncf %71 : vector<8x16xf32> to vector<8x16xbf16>
    %cst_32 = arith.constant dense<0.000000e+00> : vector<8x64xf32>
    %73 = tpu.matmul %72, %67, %cst_32 {dimension_numbers = #tpu.dot_dimension_numbers<[1], [0], [0], [1], [0, 0, 1, 1], [], []>} : vector<8x16xbf16>, vector<16x64xbf16>, vector<8x64xf32> -> vector<8x64xf32>
    %74 = vector.broadcast %5 : vector<8x1xf32> to vector<8x64xf32>
    %75 = arith.addf %73, %74 : vector<8x64xf32>
    %cst_33 = arith.constant 0.000000e+00 : f32
    %76 = vector.broadcast %cst_33 : f32 to vector<8x64xf32>
    %77 = arith.maximumf %75, %76 : vector<8x64xf32>
    %78 = vector.extract_strided_slice %28 {offsets = [0, 64], sizes = [1, 64], strides = [1, 1]} : vector<1x128xf32> to vector<1x64xf32>
    %79 = vector.extract_strided_slice %6 {offsets = [0, 0], sizes = [1, 1], strides = [1, 1]} : vector<9x1xf32> to vector<1x1xf32>
    %80 = vector.broadcast %79 : vector<1x1xf32> to vector<1x64xf32>
    %81 = arith.mulf %80, %78 : vector<1x64xf32>
    %82 = vector.extract_strided_slice %6 {offsets = [1, 0], sizes = [8, 1], strides = [1, 1]} : vector<9x1xf32> to vector<8x1xf32>
    %83 = vector.broadcast %82 : vector<8x1xf32> to vector<8x64xf32>
    %84 = arith.mulf %83, %77 : vector<8x64xf32>
    %cst_34 = arith.constant dense<0.000000e+00> : vector<64xf32>
    %85 = vector.multi_reduction <add>, %84, %cst_34 [0] : vector<8x64xf32> to vector<64xf32>
    %86 = vector.shape_cast %85 : vector<64xf32> to vector<1x64xf32>
    %87 = arith.addf %81, %86 : vector<1x64xf32>
    %88 = vector.broadcast %7 : vector<1x1xf32> to vector<1x64xf32>
    %89 = arith.addf %87, %88 : vector<1x64xf32>
    %cst_35 = arith.constant 0.000000e+00 : f32
    %90 = vector.broadcast %cst_35 : f32 to vector<1x64xf32>
    %91 = arith.maximumf %89, %90 : vector<1x64xf32>
    %92 = vector.broadcast %8 : vector<1x1xf32> to vector<1x64xf32>
    %93 = arith.mulf %92, %91 : vector<1x64xf32>
    %cst_36 = arith.constant dense<0.000000e+00> : vector<64xf32>
    %94 = vector.multi_reduction <add>, %93, %cst_36 [0] : vector<1x64xf32> to vector<64xf32>
    %95 = vector.shape_cast %94 : vector<64xf32> to vector<1x64xf32>
    %96 = vector.broadcast %14 : f32 to vector<1x64xf32>
    %97 = arith.addf %95, %96 : vector<1x64xf32>
    %98 = arith.negf %97 : vector<1x64xf32>
    %99 = math.exp %98 : vector<1x64xf32>
    %cst_37 = arith.constant 1.000000e+00 : f32
    %100 = vector.broadcast %cst_37 : f32 to vector<1x64xf32>
    %101 = arith.addf %100, %99 : vector<1x64xf32>
    %102 = arith.divf %100, %101 : vector<1x64xf32>
    %103 = tpu.concatenate %65, %102 in 1 : vector<1x64xf32>, vector<1x64xf32> -> vector<1x128xf32>
    %104 = vector.broadcast %103 : vector<1x128xf32> to vector<64x128xf32>
    %105 = arith.mulf %104, %17 : vector<64x128xf32>
    %106 = arith.truncf %105 : vector<64x128xf32> to vector<64x128xbf16>
    %107 = vector.extract_strided_slice %106 {offsets = [0, 0], sizes = [64, 64], strides = [1, 1]} : vector<64x128xbf16> to vector<64x64xbf16>
    %cst_38 = arith.constant dense<0.000000e+00> : vector<64x24xf32>
    %108 = tpu.matmul %107, %2, %cst_38 {dimension_numbers = #tpu.dot_dimension_numbers<[1], [1], [0], [0], [0, 0, 1, 0], [], []>} : vector<64x64xbf16>, vector<24x64xbf16>, vector<64x24xf32> -> vector<64x24xf32>
    %109 = vector.broadcast %9 : vector<1x24xf32> to vector<64x24xf32>
    %110 = arith.addf %108, %109 : vector<64x24xf32>
    %cst_39 = arith.constant 0.000000e+00 : f32
    %111 = vector.broadcast %cst_39 : f32 to vector<64x24xf32>
    %112 = arith.maximumf %110, %111 : vector<64x24xf32>
    %113 = vector.extract_strided_slice %112 {offsets = [0, 16], sizes = [64, 8], strides = [1, 1]} : vector<64x24xf32> to vector<64x8xf32>
    %cst_40 = arith.constant dense<0.000000e+00> : vector<64xf32>
    %114 = vector.multi_reduction <add>, %113, %cst_40 [1] : vector<64x8xf32> to vector<64xf32>
    %115 = vector.shape_cast %114 : vector<64xf32> to vector<64x1xf32>
    %cst_41 = arith.constant 8.000000e+00 : f32
    %116 = vector.broadcast %cst_41 : f32 to vector<64x1xf32>
    %117 = arith.divf %115, %116 : vector<64x1xf32>
    %118 = vector.extract_strided_slice %112 {offsets = [0, 0], sizes = [64, 16], strides = [1, 1]} : vector<64x24xf32> to vector<64x16xf32>
    %119 = arith.truncf %118 : vector<64x16xf32> to vector<64x16xbf16>
    %cst_42 = arith.constant dense<0.000000e+00> : vector<16x16xf32>
    %120 = tpu.matmul %3, %119, %cst_42 {dimension_numbers = #tpu.dot_dimension_numbers<[1], [0], [0], [1], [0, 0, 1, 1], [], []>} : vector<16x64xbf16>, vector<64x16xbf16>, vector<16x16xf32> -> vector<16x16xf32>
    %121 = vector.extract_strided_slice %120 {offsets = [0, 8], sizes = [8, 8], strides = [1, 1]} : vector<16x16xf32> to vector<8x8xf32>
    %122 = vector.extract_strided_slice %120 {offsets = [8, 0], sizes = [8, 8], strides = [1, 1]} : vector<16x16xf32> to vector<8x8xf32>
    %123 = tpu.concatenate %121, %122 in 1 : vector<8x8xf32>, vector<8x8xf32> -> vector<8x16xf32>
    %124 = arith.truncf %123 : vector<8x16xf32> to vector<8x16xbf16>
    %cst_43 = arith.constant dense<0.000000e+00> : vector<64x8xf32>
    %125 = tpu.matmul %119, %124, %cst_43 {dimension_numbers = #tpu.dot_dimension_numbers<[1], [1], [0], [0], [0, 0, 1, 0], [], []>} : vector<64x16xbf16>, vector<8x16xbf16>, vector<64x8xf32> -> vector<64x8xf32>
    %126 = vector.broadcast %10 : vector<1x8xf32> to vector<64x8xf32>
    %127 = arith.addf %125, %126 : vector<64x8xf32>
    %cst_44 = arith.constant 0.000000e+00 : f32
    %128 = vector.broadcast %cst_44 : f32 to vector<64x8xf32>
    %129 = arith.maximumf %127, %128 : vector<64x8xf32>
    %130 = vector.extract_strided_slice %11 {offsets = [0, 0], sizes = [1, 1], strides = [1, 1]} : vector<1x9xf32> to vector<1x1xf32>
    %131 = vector.broadcast %130 : vector<1x1xf32> to vector<64x1xf32>
    %132 = arith.mulf %131, %117 : vector<64x1xf32>
    %133 = vector.extract_strided_slice %11 {offsets = [0, 1], sizes = [1, 8], strides = [1, 1]} : vector<1x9xf32> to vector<1x8xf32>
    %134 = vector.broadcast %133 : vector<1x8xf32> to vector<64x8xf32>
    %135 = arith.mulf %134, %129 : vector<64x8xf32>
    %cst_45 = arith.constant dense<0.000000e+00> : vector<64xf32>
    %136 = vector.multi_reduction <add>, %135, %cst_45 [1] : vector<64x8xf32> to vector<64xf32>
    %137 = vector.shape_cast %136 : vector<64xf32> to vector<64x1xf32>
    %138 = arith.addf %132, %137 : vector<64x1xf32>
    %139 = vector.broadcast %12 : vector<1x1xf32> to vector<64x1xf32>
    %140 = arith.addf %138, %139 : vector<64x1xf32>
    %cst_46 = arith.constant 0.000000e+00 : f32
    %141 = vector.broadcast %cst_46 : f32 to vector<64x1xf32>
    %142 = arith.maximumf %140, %141 : vector<64x1xf32>
    %143 = vector.broadcast %13 : vector<1x1xf32> to vector<64x1xf32>
    %144 = arith.mulf %143, %142 : vector<64x1xf32>
    %145 = vector.broadcast %15 : f32 to vector<64x1xf32>
    %146 = arith.addf %144, %145 : vector<64x1xf32>
    %147 = arith.negf %146 : vector<64x1xf32>
    %148 = math.exp %147 : vector<64x1xf32>
    %cst_47 = arith.constant 1.000000e+00 : f32
    %149 = vector.broadcast %cst_47 : f32 to vector<64x1xf32>
    %150 = arith.addf %149, %148 : vector<64x1xf32>
    %151 = arith.divf %149, %150 : vector<64x1xf32>
    %152 = vector.extract_strided_slice %105 {offsets = [0, 0], sizes = [64, 64], strides = [1, 1]} : vector<64x128xf32> to vector<64x64xf32>
    %153 = vector.broadcast %151 : vector<64x1xf32> to vector<64x64xf32>
    %154 = arith.mulf %153, %152 : vector<64x64xf32>
    %155 = vector.extract_strided_slice %106 {offsets = [0, 64], sizes = [64, 64], strides = [1, 1]} : vector<64x128xbf16> to vector<64x64xbf16>
    %cst_48 = arith.constant dense<0.000000e+00> : vector<64x24xf32>
    %156 = tpu.matmul %155, %2, %cst_48 {dimension_numbers = #tpu.dot_dimension_numbers<[1], [1], [0], [0], [0, 0, 1, 0], [], []>} : vector<64x64xbf16>, vector<24x64xbf16>, vector<64x24xf32> -> vector<64x24xf32>
    %157 = vector.broadcast %9 : vector<1x24xf32> to vector<64x24xf32>
    %158 = arith.addf %156, %157 : vector<64x24xf32>
    %cst_49 = arith.constant 0.000000e+00 : f32
    %159 = vector.broadcast %cst_49 : f32 to vector<64x24xf32>
    %160 = arith.maximumf %158, %159 : vector<64x24xf32>
    %161 = vector.extract_strided_slice %160 {offsets = [0, 16], sizes = [64, 8], strides = [1, 1]} : vector<64x24xf32> to vector<64x8xf32>
    %cst_50 = arith.constant dense<0.000000e+00> : vector<64xf32>
    %162 = vector.multi_reduction <add>, %161, %cst_50 [1] : vector<64x8xf32> to vector<64xf32>
    %163 = vector.shape_cast %162 : vector<64xf32> to vector<64x1xf32>
    %cst_51 = arith.constant 8.000000e+00 : f32
    %164 = vector.broadcast %cst_51 : f32 to vector<64x1xf32>
    %165 = arith.divf %163, %164 : vector<64x1xf32>
    %166 = vector.extract_strided_slice %160 {offsets = [0, 0], sizes = [64, 16], strides = [1, 1]} : vector<64x24xf32> to vector<64x16xf32>
    %167 = arith.truncf %166 : vector<64x16xf32> to vector<64x16xbf16>
    %cst_52 = arith.constant dense<0.000000e+00> : vector<16x16xf32>
    %168 = tpu.matmul %3, %167, %cst_52 {dimension_numbers = #tpu.dot_dimension_numbers<[1], [0], [0], [1], [0, 0, 1, 1], [], []>} : vector<16x64xbf16>, vector<64x16xbf16>, vector<16x16xf32> -> vector<16x16xf32>
    %169 = vector.extract_strided_slice %168 {offsets = [0, 8], sizes = [8, 8], strides = [1, 1]} : vector<16x16xf32> to vector<8x8xf32>
    %170 = vector.extract_strided_slice %168 {offsets = [8, 0], sizes = [8, 8], strides = [1, 1]} : vector<16x16xf32> to vector<8x8xf32>
    %171 = tpu.concatenate %169, %170 in 1 : vector<8x8xf32>, vector<8x8xf32> -> vector<8x16xf32>
    %172 = arith.truncf %171 : vector<8x16xf32> to vector<8x16xbf16>
    %cst_53 = arith.constant dense<0.000000e+00> : vector<64x8xf32>
    %173 = tpu.matmul %167, %172, %cst_53 {dimension_numbers = #tpu.dot_dimension_numbers<[1], [1], [0], [0], [0, 0, 1, 0], [], []>} : vector<64x16xbf16>, vector<8x16xbf16>, vector<64x8xf32> -> vector<64x8xf32>
    %174 = vector.broadcast %10 : vector<1x8xf32> to vector<64x8xf32>
    %175 = arith.addf %173, %174 : vector<64x8xf32>
    %cst_54 = arith.constant 0.000000e+00 : f32
    %176 = vector.broadcast %cst_54 : f32 to vector<64x8xf32>
    %177 = arith.maximumf %175, %176 : vector<64x8xf32>
    %178 = vector.extract_strided_slice %11 {offsets = [0, 0], sizes = [1, 1], strides = [1, 1]} : vector<1x9xf32> to vector<1x1xf32>
    %179 = vector.broadcast %178 : vector<1x1xf32> to vector<64x1xf32>
    %180 = arith.mulf %179, %165 : vector<64x1xf32>
    %181 = vector.extract_strided_slice %11 {offsets = [0, 1], sizes = [1, 8], strides = [1, 1]} : vector<1x9xf32> to vector<1x8xf32>
    %182 = vector.broadcast %181 : vector<1x8xf32> to vector<64x8xf32>
    %183 = arith.mulf %182, %177 : vector<64x8xf32>
    %cst_55 = arith.constant dense<0.000000e+00> : vector<64xf32>
    %184 = vector.multi_reduction <add>, %183, %cst_55 [1] : vector<64x8xf32> to vector<64xf32>
    %185 = vector.shape_cast %184 : vector<64xf32> to vector<64x1xf32>
    %186 = arith.addf %180, %185 : vector<64x1xf32>
    %187 = vector.broadcast %12 : vector<1x1xf32> to vector<64x1xf32>
    %188 = arith.addf %186, %187 : vector<64x1xf32>
    %cst_56 = arith.constant 0.000000e+00 : f32
    %189 = vector.broadcast %cst_56 : f32 to vector<64x1xf32>
    %190 = arith.maximumf %188, %189 : vector<64x1xf32>
    %191 = vector.broadcast %13 : vector<1x1xf32> to vector<64x1xf32>
    %192 = arith.mulf %191, %190 : vector<64x1xf32>
    %193 = vector.broadcast %15 : f32 to vector<64x1xf32>
    %194 = arith.addf %192, %193 : vector<64x1xf32>
    %195 = arith.negf %194 : vector<64x1xf32>
    %196 = math.exp %195 : vector<64x1xf32>
    %cst_57 = arith.constant 1.000000e+00 : f32
    %197 = vector.broadcast %cst_57 : f32 to vector<64x1xf32>
    %198 = arith.addf %197, %196 : vector<64x1xf32>
    %199 = arith.divf %197, %198 : vector<64x1xf32>
    %200 = vector.extract_strided_slice %105 {offsets = [0, 64], sizes = [64, 64], strides = [1, 1]} : vector<64x128xf32> to vector<64x64xf32>
    %201 = vector.broadcast %199 : vector<64x1xf32> to vector<64x64xf32>
    %202 = arith.mulf %201, %200 : vector<64x64xf32>
    %203 = tpu.concatenate %154, %202 in 1 : vector<64x64xf32>, vector<64x64xf32> -> vector<64x128xf32>
    %c0_58 = arith.constant 0 : index
    %c0_59 = arith.constant 0 : index
    %c0_60 = arith.constant 0 : index
    %204 = vector.load %arg5[%c0_58, %c0_59, %c0_60] : memref<1x64x128xf32, #tpu.memory_space<vmem>>, vector<1x64x128xf32>
    %205 = vector.shape_cast %204 : vector<1x64x128xf32> to vector<64x128xf32>
    %206 = vector.shape_cast %203 : vector<64x128xf32> to vector<1x64x128xf32>
    tpu.vector_store %arg5[%c0_58, %c0_59, %c0_60], %206 {strides = array<i32>} : memref<1x64x128xf32, #tpu.memory_space<vmem>>, vector<1x64x128xf32>,
    return
  }
  func.func @transform_0(%arg0: i32) -> (i32, i32, i32) {
    %c0_i32 = arith.constant 0 : i32
    %c0_i32_0 = arith.constant 0 : i32
    %c0_i32_1 = arith.constant 0 : i32
    return %arg0, %c0_i32, %c0_i32_0 : i32, i32, i32
  }
  func.func @transform_1(%arg0: i32) -> (i32, i32) {
    %c0_i32 = arith.constant 0 : i32
    %c0_i32_0 = arith.constant 0 : i32
    %c0_i32_1 = arith.constant 0 : i32
    return %c0_i32, %c0_i32_0 : i32, i32
  }
  func.func @transform_2(%arg0: i32) -> (i32, i32) {
    %c0_i32 = arith.constant 0 : i32
    %c0_i32_0 = arith.constant 0 : i32
    %c0_i32_1 = arith.constant 0 : i32
    return %c0_i32, %c0_i32_0 : i32, i32
  }
  func.func @transform_3(%arg0: i32) -> i32 {
    %c0_i32 = arith.constant 0 : i32
    %c0_i32_0 = arith.constant 0 : i32
    return %c0_i32 : i32
  }
  func.func @transform_4(%arg0: i32) -> (i32, i32, i32) {
    %c0_i32 = arith.constant 0 : i32
    %c0_i32_0 = arith.constant 0 : i32
    %c0_i32_1 = arith.constant 0 : i32
    return %arg0, %c0_i32, %c0_i32_0 : i32, i32, i32
  }
}

</mosaic_0001>

<bundles_post_ra>
// kernel: tpu_custom_call.1
= control target key start
LH: loop header
LB: loop body
LE: loop exit
PB: predicated region body
PF: predicated region fallthrough
CT: control target
= control target key end

     0   :  { %9 = vsyncpa [#allocation4], 0  ;;  %s2647_s0 = inlined_call_operand.vmem [shape: f32[1,64,128], index: 0, kind: input, shape index: {}]   ;;  %s2648_s1 = inlined_call_operand.vmem [shape: bf16[80,64], index: 1, kind: input, shape index: {}]   ;;  %s2649_s2 = inlined_call_operand.vmem [shape: f32[104,24], index: 2, kind: input, shape index: {}]   ;;  %s2650_s3 = inlined_call_operand.vmem [shape: f32[2], index: 3, kind: input, shape index: {}]   ;;  %s2651_s4 = inlined_call_operand.hbm [shape: f32[1,64,128], index: 4, kind: output, shape index: {}]  }
   0x1   :  { %10 = vsyncpa [#allocation3], 0  ;;  %s23_s17 = sshll.u32 %s2650_s3, 4  ;;  %s24_s17 = int_to_ptr.vmem [resolvable:$true] %s23_s17 }
   0x2   :  { %s1932_s18 = scalar_lea.vmem %s24_s17, 16  ;;  %p1937_p1 = scmp.lt.s32.totalorder %s24_s17, %s24_s17 }
   0x3   :  { %p1933_p0 = scmp.ne.s32.totalorder %s24_s17, %s1932_s18  ;;  %p1938_p2 = scmp.lt.s32.totalorder %s1932_s18, %s1932_s18 }
   0x5   :  { %p1939_p3 = por %p1938_p2, %p1937_p1 }
   0x7   :  { %p1940_p4 = pnand %p1939_p3, %p1933_p0 }
   0x9   :  { %1943 = shalt.err (!%p1940_p4)
}
   0xa   :  { %s1968_s19 = smov [#allocation2]  }
   0xb   :  { %26 = dma.vmem_to_smem %s24_s17, 16, %s1968_s19, [#allocation4]  }
   0xc   :  { %1964 = dma.done.wait [#allocation4], 16  }
   0xd   :  { %1965 = vsyncadd [#allocation4], 4294967280 }
   0xe   :  { %30 = sfence }
   0xf   :  { %v2011_v0 = vld [vmem:[%s2647_s0 + $0x30] sm:$0xff]  ;;  %v2016_v1 = vld [vmem:[%s2647_s0 + $0x38] sm:$0xff]  ;;  %v2021_v2 = vld [vmem:[%s2647_s0 + $0x20] sm:$0xff]  ;;  %v1969_v5 = vmov 0   ;;  %vm92_vm0 = vcmask 523264   ;;  %v1970_v17 = vmov 0.0  }
  0x10   :  { %v68_v3 = vpack.c.bf16 %v2016_v1, %v2011_v0  ;;  %v2028_v4 = vld [vmem:[%s2647_s0 + $0x28] sm:$0xff]  ;;  %1852 = vset.pattern.permute.xlu0 %v1969_v5  ;;  %1853 = vset.pattern.permute.xlu1 %v1969_v5  ;;  %v2035_v7 = vld [vmem:[%s2647_s0 + $0x10] sm:$0xff]  ;;  %v2040_v8 = vld [vmem:[%s2647_s0 + $0x18] sm:$0xff]  ;;  %vm1971_vm1 = vmmov 0   ;;  %s1972_s16 = smov 64   ;;  %s1973_s19 = smov 120  }
  0x11   :  { %v67_v6 = vpack.c.bf16 %v2028_v4, %v2021_v2  ;;  %v1854_v9 = vld [vmem:[%s2648_s1] sm:$0xff]   ;;  %v2053_v11 = vld [vmem:[%s2647_s0 + $0x8] sm:$0xff]  ;;  %v66_v13 = vpack.c.bf16 %v2040_v8, %v2035_v7  ;;  %1742 = vmatprep.subr.bf16.mxu1 %v1970_v17  ;;  %1744 = vmatprep.mubr.msk.bf16.mxu1 %vm1971_vm1, %v1970_v17  ;;  %s1974_s20 = smov 8   ;;  %vm219_vm2 = vcmask 64512   ;;  %vm227_vm3 = vcmask 130048   ;;  %v45_v47 = vld [vmem:[%s2649_s2 + $0x18] sm:$0xff] }
  0x12   :  { %1730 = vmatprep.subr.bf16.mxu0 %v68_v3  ;;  %v2048_v10 = vld [vmem:[%s2647_s0] sm:$0xff]  ;;  %1738 = vmatprep.mubr.msk.bf16.mxu0 %vm92_vm0, %v1854_v9  ;;  %v43_v14 = vld [vmem:[%s2649_s2 + $0x8] sm:$0xff]  ;;  %v44_v52 = vld [vmem:[%s2649_s2 + $0x10] sm:$0xff]  ;;  %vm290_vm4 = vcmask 1046528   ;;  %s55_s10 = sld [smem:[#allocation2]] }
  0x13   :  { %1731 = vmatpush3.bf16.msra.mxu0 %v68_v3  ;;  %v42_v12 = vld [vmem:[%s2649_s2] sm:$0xff]  ;;  %v65_v15 = vpack.c.bf16 %v2053_v11, %v2048_v10  ;;  %v1855_v16 = vld [vmem:[%s2648_s1 + $0x8] ss:$0 sps:$4 sm:$0xff]   ;;  %v1856_v30 = vld [vmem:[%s2648_s1 + $0xc] sm:$0xff]   ;;  %s1630_s21 = sld [smem:[#allocation2 + $0x1]] }
  0x14   :  { %1732 = vmatprep.subr.bf16.mxu0 %v67_v6  ;;  %71 = vperm.xlu0 %1852, %v42_v12   ;;  %v46_v50 = vld [vmem:[%s2649_s2 + $0x20] sm:$0xff]  ;;  %v47_v51 = vld [vmem:[%s2649_s2 + $0x28] sm:$0x1]  ;;  %v48_v53 = vld [vmem:[%s2649_s2 + $0x30] sm:$0x1] }
  0x15   :  { %v49_v54 = vld [vmem:[%s2649_s2 + $0x38] sm:$0x1] }
  0x17   :  { %1733 = vmatpush3.bf16.msra.mxu0 %v67_v6 }
  0x18   :  { %1734 = vmatprep.subr.bf16.mxu0 %v66_v13  ;;  %76 = vperm.xlu0 %1852, %v43_v14  }
  0x1b   :  { %1735 = vmatpush3.bf16.msra.mxu0 %v66_v13 }
  0x1c   :  { %1736 = vmatprep.subr.bf16.mxu0 %v65_v15 }
  0x1f   :  { %1737 = vmatpush3.bf16.msra.mxu0 %v65_v15 }
  0x22   :  { %1739 = vmatmul.mubr.msk.bf16.vlgmr.msra.gmra.mxu0 %vm92_vm0, %v1855_v16 }
  0x8f   :  { %v72_v18 = vpop.permute.xlu0 %71 }
  0x93   :  { %v77_v23 = vpop.permute.xlu0 %76 }
  0xe2   :  { %v2073_v19 = vpop.f32.mrf.mxu0 }
  0xe4   :  { %v133_v20 = vpop.f32.mrf.mxu0 }
  0xe5   :  { %v134_v22 = vadd.f32 %v133_v20, %v72_v18 }
  0xe6   :  { %v1741_v21 = vpop.f32.mrf.mxu0 }
  0xe7   :  { %v147_v26 = vmax.f32 %v134_v22, 0.0 }
  0xe8   :  { %v136_v24 = vpop.f32.mrf.mxu0 }
  0xe9   :  { %v137_v25 = vadd.f32 %v136_v24, %v77_v23 }
  0xeb   :  { %v148_v27 = vmax.f32 %v137_v25, 0.0 }
  0xed   :  { %v158_v28 = vpack.c.bf16 %v148_v27, %v147_v26  ;;  %v1857_v27 = vld [vmem:[%s2648_s1 + $0x1c] ss:$0 sps:$4 sm:$0xff]  }
  0xee   :  { %1834 = vmatprep.subr.msk.bf16.mxu0 %vm92_vm0, %v1857_v27 }
  0xef   :  { %326 = vrot.lane.b32.xlu0 %v158_v28, %s1972_s16  ;;  %v168_v29 = vsel %vm92_vm0, %v158_v28, 0 }
  0xf0   :  { %1743 = vmatpush3.bf16.xpose.msra.mxu1 %v168_v29  ;;  %v2134_v29 = vsel %vm92_vm0, %v1857_v27, 0 }
  0xf1   :  { %1748 = vmatprep.subr.bf16.mxu1 %v1970_v17  ;;  %1767 = vmatpush3.bf16.xpose.msra.mxu0 %v2134_v29 }
  0xf7   :  { %1745 = vmatmul.mubr.msk.bf16.vlgmr.msra.gmra.mxu1 %vm92_vm0, %v1856_v30 }
  0xf8   :  { %1749 = vmatpush3.bf16.msra.mxu1 %v158_v28  ;;  %1750 = vmatprep.mubr.msk.bf16.mxu1 %vm1971_vm1, %v1970_v17  ;;  %v2130_v28 = vld [vmem:[%s2648_s1 + $0x14] sm:$0xff]  }
  0xf9   :  { %1754 = vmatprep.subr.bf16.mxu1 %v1970_v17  ;;  %1835 = vmatprep.subr.msk.bf16.mxu0 %vm92_vm0, %v2130_v28 }
 0x161   :  { %v327_v37 = vpop.permute.xlu0 %326 }
 0x162   :  { %v329_v40 = vsel %vm92_vm0, %v327_v37, 0 }
 0x1b7   :  { %v204_v31 = vpop.f32.mrf.mxu1 }
 0x1b8   :  { %212 = vrot.lane.b32.xlu1 %v204_v31, %s1973_s19 }
 0x1b9   :  { %v1746_v32 = vpop.f32.mrf.mxu1 }
 0x1bb   :  { %v207_v33 = vpop.f32.mrf.mxu1 }
 0x1bc   :  { %216 = vrot.lane.b32.xlu1 %v207_v33, %s1974_s20 }
 0x1bd   :  { %v1747_v34 = vpop.f32.mrf.mxu1 }
 0x22a   :  { %v213_v35 = vpop.permute.xlu1 %212 }
 0x22e   :  { %v217_v36 = vpop.permute.xlu1 %216 }
 0x22f   :  { %v220_v38 = vsel %vm219_vm2, %v213_v35, %v217_v36 }
 0x230   :  { %v221_v39 = vpack.c.bf16 %v220_v38, %v220_v38 }
 0x232   :  { %1751 = vmatmul.mubr.msk.bf16.vlgmr.msra.gmra.mxu1 %vm227_vm3, %v221_v39 }
 0x233   :  { %1755 = vmatpush3.bf16.xpose.msra.mxu1 %v329_v40  ;;  %1756 = vmatprep.mubr.msk.bf16.mxu1 %vm1971_vm1, %v1970_v17 }
 0x234   :  { %1760 = vmatprep.subr.bf16.mxu1 %v1970_v17 }
 0x23a   :  { %1757 = vmatmul.mubr.msk.bf16.vlgmr.msra.gmra.mxu1 %vm92_vm0, %v1856_v30  ;;  %v2141_v30 = vsel %vm92_vm0, %v2130_v28, 0 }
 0x23b   :  { %1761 = vmatpush3.bf16.msra.mxu1 %v327_v37  ;;  %1762 = vmatprep.mubr.msk.bf16.mxu1 %vm1971_vm1, %v1970_v17 }
 0x23c   :  { %1778 = vmatprep.subr.bf16.mxu1 %v1970_v17  ;;  %1769 = vmatpush3.bf16.xpose.msra.mxu0 %v2141_v30 }
 0x23d   :  { %1837 = vmatprep.subr.msk.bf16.mxu0 %vm92_vm0, %v1857_v27 }
 0x2f2   :  { %v265_v41 = vpop.f32.mrf.mxu1 }
 0x2f4   :  { %v1752_v42 = vpop.f32.mrf.mxu1 }
 0x2f6   :  { %v268_v43 = vpop.f32.mrf.mxu1 }
 0x2f8   :  { %v1753_v44 = vpop.f32.mrf.mxu1 }
 0x2fa   :  { %v365_v45 = vpop.f32.mrf.mxu1 }
 0x2fb   :  { %373 = vrot.lane.b32.xlu1 %v365_v45, %s1973_s19 }
 0x2fc   :  { %v1758_v46 = vpop.f32.mrf.mxu1 }
 0x2fe   :  { %v368_v48 = vpop.f32.mrf.mxu1 }
 0x2ff   :  { %224 = vperm.xlu1 %1853, %v45_v47   ;;  %377 = vrot.lane.b32.xlu0 %v368_v48, %s1974_s20 }
 0x300   :  { %v1759_v49 = vpop.f32.mrf.mxu1 }
 0x303   :  { %274 = vperm.xlu0 %1852, %v46_v50   ;;  %280 = vperm.xlu1 %1853, %v47_v51  }
 0x307   :  { %81 = vperm.xlu0 %1852, %v44_v52   ;;  %305 = vperm.xlu1 %1853, %v48_v53  }
 0x30b   :  { %312 = vperm.xlu1 %1853, %v49_v54  }
 0x36d   :  { %v374_v55 = vpop.permute.xlu1 %373 }
 0x371   :  { %v378_v56 = vpop.permute.xlu0 %377 }
 0x372   :  { %v380_v57 = vsel %vm219_vm2, %v374_v55, %v378_v56 }
 0x373   :  { %v381_v58 = vpack.c.bf16 %v380_v57, %v380_v57 }
 0x375   :  { %1763 = vmatmul.mubr.msk.bf16.vlgmr.msra.gmra.mxu1 %vm227_vm3, %v381_v58 }
 0x376   :  { %1786 = vmatprep.mubr.msk.bf16.mxu1 %vm1971_vm1, %v1970_v17 }
 0x37a   :  { %v225_v59 = vpop.permute.xlu1 %224 }
 0x37b   :  { %v266_v31 = vadd.f32 %v265_v41, %v225_v59 }
 0x37d   :  { %v271_v32 = vmax.f32 %v266_v31, 0.0 }
 0x37e   :  { %v275_v5 = vpop.permute.xlu0 %274  ;;  %v281_v9 = vpop.permute.xlu1 %280 }
 0x37f   :  { %v284_v34 = vrot.slane %v271_v32, 7 }
 0x381   :  { %v286_v36 = vmul.f32 %v284_v34, %v275_v5  ;;  %v287_v37 = vmul.f32 %v284_v34, %v281_v9 }
 0x382   :  { %v82_v33 = vpop.permute.xlu0 %81  ;;  %v306_v57 = vpop.permute.xlu1 %305 }
 0x383   :  { %v142_v35 = vadd.f32 %v2073_v19, %v82_v33  ;;  %v291_v39 = vrot.slane %v286_v36, 1  ;;  %v292_v40 = vrot.slane %v287_v37, 1 }
 0x385   :  { %v149_v38 = vmax.f32 %v142_v35, 0.0  ;;  %v293_v43 = vsel %vm290_vm4, %v291_v39, %v292_v40 }
 0x386   :  { %v295_v45 = vsel %vm92_vm0, %v293_v43, 0.0 }
 0x387   :  { %v150_v42 = vrot.slane %v149_v38, 4  ;;  %v296_v47 = vrot.slane %v295_v45, 4 }
 0x389   :  { %v151_v44 = vadd.f32 %v150_v42, %v149_v38  ;;  %v297_v41 = vadd.f32 %v296_v47, %v295_v45 }
 0x38b   :  { %v152_v46 = vrot.slane %v151_v44, 2  ;;  %v298_v50 = vrot.slane %v297_v41, 2 }
 0x38d   :  { %v153_v48 = vadd.f32 %v152_v46, %v151_v44  ;;  %v299_v52 = vadd.f32 %v298_v50, %v297_v41 }
 0x38f   :  { %v154_v49 = vrot.slane %v153_v48, 1  ;;  %v300_v53 = vrot.slane %v299_v52, 1 }
 0x391   :  { %v155_v51 = vadd.f32 %v154_v49, %v153_v48  ;;  %v301_v55 = vadd.f32 %v300_v53, %v299_v52 }
 0x393   :  { %v157_v19 = vmul.f32 0.125, %v155_v51 }
 0x395   :  { %v277_v54 = vmul.f32 %v275_v5, %v157_v19 }
 0x397   :  { %v302_v56 = vadd.f32 %v301_v55, %v277_v54 }
 0x399   :  { %v308_v58 = vadd.f32 %v306_v57, %v302_v56 }
 0x435   :  { %v420_v60 = vpop.f32.mrf.mxu1 }
 0x436   :  { %v421_v61 = vadd.f32 %v420_v60, %v225_v59  ;;  %v309_v59 = vmax.f32 %v308_v58, 0.0  ;;  %v313_v60 = vpop.permute.xlu1 %312 }
 0x437   :  { %v1764_v62 = vpop.f32.mrf.mxu1 }
 0x438   :  { %v426_v63 = vmax.f32 %v421_v61, 0.0  ;;  %v315_v61 = vmul.f32 %v313_v60, %v309_v59  ;;  %v317_v62 = vstv %s55_s10 }
 0x439   :  { %v423_v3 = vpop.f32.mrf.mxu1 }
 0x43a   :  { %v428_v6 = vrot.slane %v426_v63, 7  ;;  %v318_v63 = vadd.f32 %v317_v62, %v315_v61 }
 0x43b   :  { %v1765_v12 = vpop.f32.mrf.mxu1 }
 0x43c   :  { %v430_v13 = vmul.f32 %v428_v6, %v275_v5  ;;  %v431_v14 = vmul.f32 %v428_v6, %v281_v9  ;;  %v1638_v12 = vmul.f32 -1.442695, %v318_v63 }
 0x43e   :  { %v434_v15 = vrot.slane %v430_v13, 1  ;;  %v435_v16 = vrot.slane %v431_v14, 1  ;;  %1860 = vpow2.f32 %v1638_v12 }
 0x440   :  { %v436_v18 = vsel %vm290_vm4, %v434_v15, %v435_v16 }
 0x441   :  { %v438_v20 = vsel %vm92_vm0, %v436_v18, 0.0 }
 0x442   :  { %v439_v21 = vrot.slane %v438_v20, 4 }
 0x444   :  { %v440_v22 = vadd.f32 %v439_v21, %v438_v20 }
 0x446   :  { %v441_v23 = vrot.slane %v440_v22, 2 }
 0x448   :  { %v442_v24 = vadd.f32 %v441_v23, %v440_v22  ;;  %v462_v22 = vlaneseq }
 0x44a   :  { %v443_v25 = vrot.slane %v442_v24, 1  ;;  %v463_v23 = vshrl.u32 %v462_v22, 7 }
 0x44b   :  { %v1861_v5 = vpop.eup %1860 }
 0x44c   :  { %v444_v26 = vadd.f32 %v443_v25, %v442_v24  ;;  %v322_v18 = vadd.f32 1.0, %v1861_v5  ;;  %v464_v24 = vsub.s32 0, %v463_v23 }
 0x44e   :  { %446 = vrot.lane.b32.xlu0 %v444_v26, %s1972_s16 }
 0x4c0   :  { %v447_v3 = vpop.permute.xlu0 %446 }
 0x4c1   :  { %v449_v6 = vadd.f32 %v447_v3, %v277_v54 }
 0x4c3   :  { %v450_v9 = vadd.f32 %v449_v6, %v306_v57  ;;  %v1859_v6 = vld [vmem:[%s2648_s1 + $0x20] sm:$0xff]   ;;  %s1975_s1 = smov 112  }
 0x4c5   :  { %v451_v13 = vmax.f32 %v450_v9, 0.0 }
 0x4c7   :  { %v452_v14 = vmul.f32 %v451_v13, %v313_v60 }
 0x4c9   :  { %v454_v15 = vadd.f32 %v452_v14, %v317_v62 }
 0x4cb   :  { %v1641_v16 = vmul.f32 -1.442695, %v454_v15 }
 0x4cd   :  { %1862 = vpow2.f32 %v1641_v16 }
 0x4ce   :  { %1864 = vrcp.f32 %v322_v18 }
 0x4da   :  { %v1863_v20 = vpop.eup %1862 }
 0x4db   :  { %v458_v21 = vadd.f32 1.0, %v1863_v20  ;;  %v1865_v25 = vpop.eup %1864 }
 0x4dd   :  { %1866 = vrcp.f32 %v458_v21 }
 0x4ea   :  { %v1867_v26 = vpop.eup %1866 }
 0x4eb   :  { %v461_v27 = vsel %vm92_vm0, %v1865_v25, %v1867_v26 }
 0x4ec   :  { %v465_v31 = vrot.slane %v461_v27, %v464_v24 }
 0x4ee   :  { %v2150_v32 = vmul.f32 %v465_v31, %v2035_v7  ;;  %v2153_v33 = vmul.f32 %v465_v31, %v2040_v8  ;;  %v2156_v34 = vmul.f32 %v465_v31, %v2048_v10  ;;  %v2159_v35 = vmul.f32 %v465_v31, %v2053_v11 }
 0x4ef   :  { %v2162_v36 = vmul.f32 %v465_v31, %v2021_v2  ;;  %v2165_v37 = vmul.f32 %v465_v31, %v2028_v4  ;;  %v2172_v8 = vmul.f32 %v465_v31, %v2011_v0  ;;  %v2175_v10 = vmul.f32 %v465_v31, %v2016_v1 }
 0x4f0   :  { %v475_v38 = vpack.c.bf16 %v2153_v33, %v2150_v32  ;;  %v474_v7 = vpack.c.bf16 %v2159_v35, %v2156_v34 }
 0x4f1   :  { %v476_v2 = vpack.c.bf16 %v2165_v37, %v2162_v36  ;;  %v477_v4 = vpack.c.bf16 %v2175_v10, %v2172_v8 }
 0x4f2   :  { %1059 = vrot.lane.b32.xlu1 %v475_v38, %s1972_s16  ;;  %1057 = vrot.lane.b32.xlu0 %v474_v7, %s1972_s16 }
 0x4f3   :  { %1770 = vmatprep.mubr.msk.bf16.mxu0 %vm92_vm0, %v474_v7 }
 0x4f4   :  { %1771 = vmatmul.mubr.msk.bf16.vlgmr.msra.gmra.mxu0 %vm92_vm0, %v475_v38 }
 0x4f5   :  { %1774 = vmatprep.mubr.msk.bf16.mxu0 %vm92_vm0, %v476_v2  ;;  %1801 = vmatpush3.bf16.xpose.msra.mxu0 %v2134_v29 }
 0x4f6   :  { %1063 = vrot.lane.b32.xlu1 %v477_v4, %s1972_s16  ;;  %1061 = vrot.lane.b32.xlu0 %v476_v2, %s1972_s16  ;;  %s1976_s16 = smov 1  }
 0x4f7   :  { %1838 = vmatprep.subr.msk.bf16.mxu0 %vm92_vm0, %v2130_v28 }
 0x4fc   :  { %1775 = vmatmul.mubr.msk.bf16.gmra.mxu0 %vm92_vm0, %v477_v4 }
 0x4fd   :  { %1803 = vmatpush3.bf16.xpose.msra.mxu0 %v2141_v30  ;;  %v2200_v30 = vld [vmem:[%s2649_s2 + $0x40] ss:$0 sm:$0xff] }
 0x564   :  { %v1060_v0 = vpop.permute.xlu1 %1059  ;;  %v1058_v1 = vpop.permute.xlu0 %1057 }
 0x565   :  { %1804 = vmatprep.mubr.msk.bf16.mxu0 %vm92_vm0, %v1058_v1 }
 0x566   :  { %1805 = vmatmul.mubr.msk.bf16.vlgmr.msra.gmra.mxu0 %vm92_vm0, %v1060_v0 }
 0x568   :  { %v1062_v11 = vpop.permute.xlu0 %1061  ;;  %v1064_v29 = vpop.permute.xlu1 %1063 }
 0x569   :  { %1808 = vmatprep.mubr.msk.bf16.mxu0 %vm92_vm0, %v1062_v11 }
 0x56e   :  { %1809 = vmatmul.mubr.msk.bf16.gmra.mxu0 %vm92_vm0, %v1064_v29 }
 0x5b4   :  { %v1772_v39 = vpop.f32.mrf.mxu0 }
 0x5b5   :  { %v2227_v54 = vadd.f32 %v1772_v39, %v2200_v30 }
 0x5b6   :  { %v542_v40 = vpop.f32.mrf.mxu0 }
 0x5b7   :  { %v575_v59 = vmax.f32 %v2227_v54, 0.0  ;;  %v2242_v60 = vadd.f32 %v2200_v30, %v542_v40 }
 0x5b8   :  { %v1773_v42 = vpop.f32.mrf.mxu0 }
 0x5b9   :  { %v2217_v52 = vadd.f32 %v1773_v42, %v2200_v30  ;;  %v573_v63 = vmax.f32 %v2242_v60, 0.0 }
 0x5ba   :  { %v545_v28 = vpop.f32.mrf.mxu0 }
 0x5bb   :  { %v576_v56 = vmax.f32 %v2217_v52, 0.0  ;;  %v2234_v57 = vadd.f32 %v2200_v30, %v545_v28 }
 0x5bc   :  { %v1776_v43 = vpop.f32.mrf.mxu0 }
 0x5bd   :  { %v2203_v45 = vadd.f32 %v1776_v43, %v2200_v30  ;;  %v646_v61 = vpack.c.bf16 %v576_v56, %v575_v59  ;;  %v574_v62 = vmax.f32 %v2234_v57, 0.0 }
 0x5be   :  { %v558_v44 = vpop.f32.mrf.mxu0 }
 0x5bf   :  { %v579_v41 = vmax.f32 %v2203_v45, 0.0  ;;  %v2210_v49 = vadd.f32 %v2200_v30, %v558_v44  ;;  %v645_v3 = vpack.c.bf16 %v574_v62, %v573_v63 }
 0x5c0   :  { %v1777_v46 = vpop.f32.mrf.mxu0 }
 0x5c1   :  { %v2206_v47 = vadd.f32 %v1777_v46, %v2200_v30  ;;  %v577_v55 = vmax.f32 %v2210_v49, 0.0 }
 0x5c2   :  { %v561_v48 = vpop.f32.mrf.mxu0 }
 0x5c3   :  { %v580_v50 = vmax.f32 %v2206_v47, 0.0  ;;  %v2214_v51 = vadd.f32 %v2200_v30, %v561_v48 }
 0x5c5   :  { %v2223_v19 = vpack.c.bf16 %v580_v50, %v579_v41  ;;  %v578_v53 = vmax.f32 %v2214_v51, 0.0 }
 0x5c7   :  { %1779 = vmatpush3.bf16.msra.mxu1 %v2223_v19  ;;  %v647_v58 = vpack.c.bf16 %v578_v53, %v577_v55 }
 0x5c8   :  { %1780 = vmatprep.subr.bf16.mxu1 %v1970_v17 }
 0x5cb   :  { %1781 = vmatpush3.bf16.msra.mxu1 %v647_v58 }
 0x5cc   :  { %1782 = vmatprep.subr.bf16.mxu1 %v1970_v17 }
 0x5cf   :  { %1783 = vmatpush3.bf16.msra.mxu1 %v646_v61 }
 0x5d0   :  { %1784 = vmatprep.subr.bf16.mxu1 %v1970_v17 }
 0x5d3   :  { %1785 = vmatpush3.bf16.msra.mxu1 %v645_v3 }
 0x5d6   :  { %1787 = vmatmul.mubr.msk.bf16.vlgmr.msra.gmra.mxu1 %vm92_vm0, %v1859_v6 }
 0x5d7   :  { %1792 = vmatprep.mubr.msk.bf16.mxu1 %vm227_vm3, %v645_v3 }
 0x626   :  { %v1806_v9 = vpop.f32.mrf.mxu0 }
 0x627   :  { %v2306_v46 = vadd.f32 %v1806_v9, %v2200_v30 }
 0x628   :  { %v1111_v12 = vpop.f32.mrf.mxu0 }
 0x629   :  { %v2262_v14 = vadd.f32 %v2200_v30, %v1111_v12 }
 0x62a   :  { %v1807_v13 = vpop.f32.mrf.mxu0 }
 0x62b   :  { %v1142_v5 = vmax.f32 %v2262_v14, 0.0  ;;  %v2295_v28 = vadd.f32 %v1807_v13, %v2200_v30 }
 0x62c   :  { %v1114_v15 = vpop.f32.mrf.mxu0 }
 0x62d   :  { %v2265_v16 = vadd.f32 %v2200_v30, %v1114_v15  ;;  %v1145_v3 = vmax.f32 %v2295_v28, 0.0 }
 0x62e   :  { %v1810_v25 = vpop.f32.mrf.mxu0 }
 0x62f   :  { %v1143_v18 = vmax.f32 %v2265_v16, 0.0  ;;  %v2283_v11 = vadd.f32 %v1810_v25, %v2200_v30 }
 0x630   :  { %v1127_v26 = vpop.f32.mrf.mxu0 }
 0x631   :  { %v1214_v20 = vpack.c.bf16 %v1143_v18, %v1142_v5  ;;  %v1148_v40 = vmax.f32 %v2283_v11, 0.0  ;;  %v2292_v42 = vadd.f32 %v2200_v30, %v1127_v26 }
 0x632   :  { %v1811_v27 = vpop.f32.mrf.mxu0 }
 0x633   :  { %1826 = vmatprep.mubr.msk.bf16.mxu0 %vm227_vm3, %v1214_v20  ;;  %v2278_v4 = vadd.f32 %v1811_v27, %v2200_v30  ;;  %v1146_v48 = vmax.f32 %v2292_v42, 0.0 }
 0x634   :  { %v1130_v0 = vpop.f32.mrf.mxu0 }
 0x635   :  { %v1149_v29 = vmax.f32 %v2278_v4, 0.0  ;;  %v2288_v39 = vadd.f32 %v2200_v30, %v1130_v0  ;;  %v2425_v4 = vld [vmem:[%s2649_s2 + $0x50] ss:$0 sm:$0xff] }
 0x637   :  { %v2301_v43 = vpack.c.bf16 %v1149_v29, %v1148_v40  ;;  %v1147_v44 = vmax.f32 %v2288_v39, 0.0 }
 0x639   :  { %v1216_v12 = vpack.c.bf16 %v1147_v44, %v1146_v48 }
 0x696   :  { %v691_v21 = vpop.f32.mrf.mxu1 }
 0x697   :  { %699 = vrot.lane.b32.xlu0 %v691_v21, %s1973_s19 }
 0x698   :  { %v1788_v22 = vpop.f32.mrf.mxu1 }
 0x69a   :  { %v694_v23 = vpop.f32.mrf.mxu1 }
 0x69b   :  { %703 = vrot.lane.b32.xlu1 %v694_v23, %s1974_s20 }
 0x69c   :  { %v1789_v24 = vpop.f32.mrf.mxu1 }
 0x709   :  { %v700_v31 = vpop.permute.xlu0 %699 }
 0x70d   :  { %v704_v38 = vpop.permute.xlu1 %703 }
 0x70e   :  { %v706_v7 = vsel %vm219_vm2, %v700_v31, %v704_v38 }
 0x70f   :  { %v707_v2 = vpack.c.bf16 %v706_v7, %v706_v7 }
 0x711   :  { %1836 = vmatprep.subr.msk.bf16.mxu1 %vm227_vm3, %v707_v2  ;;  %v725_v1 = vsel %vm227_vm3, %v707_v2, 0 }
 0x712   :  { %1791 = vmatpush3.bf16.xpose.msra.mxu1 %v725_v1 }
 0x713   :  { %1812 = vmatprep.subr.bf16.mxu1 %v1970_v17 }
 0x719   :  { %1793 = vmatmul.mubr.msk.bf16.vlgmr.msra.gmra.mxu1 %vm227_vm3, %v646_v61  ;;  %v1144_v61 = vmax.f32 %v2306_v46, 0.0 }
 0x71a   :  { %1796 = vmatprep.mubr.msk.bf16.mxu1 %vm227_vm3, %v647_v58  ;;  %1813 = vmatpush3.bf16.msra.mxu1 %v2301_v43 }
 0x71b   :  { %1814 = vmatprep.subr.bf16.mxu1 %v1970_v17  ;;  %v1215_v30 = vpack.c.bf16 %v1145_v3, %v1144_v61 }
 0x71e   :  { %1815 = vmatpush3.bf16.msra.mxu1 %v1216_v12 }
 0x71f   :  { %1816 = vmatprep.subr.bf16.mxu1 %v1970_v17 }
 0x721   :  { %1797 = vmatmul.mubr.msk.bf16.gmra.mxu1 %vm227_vm3, %v2223_v19 }
 0x722   :  { %1817 = vmatpush3.bf16.msra.mxu1 %v1215_v30  ;;  %1820 = vmatprep.mubr.msk.bf16.mxu1 %vm1971_vm1, %v1970_v17 }
 0x723   :  { %1818 = vmatprep.subr.bf16.mxu1 %v1970_v17 }
 0x726   :  { %1819 = vmatpush3.bf16.msra.mxu1 %v1214_v20 }
 0x729   :  { %1821 = vmatmul.mubr.msk.bf16.vlgmr.msra.gmra.mxu1 %vm92_vm0, %v1859_v6 }
 0x7d9   :  { %v1794_v58 = vpop.f32.mrf.mxu1 }
 0x7db   :  { %v761_v9 = vpop.f32.mrf.mxu1 }
 0x7dd   :  { %v1795_v13 = vpop.f32.mrf.mxu1 }
 0x7df   :  { %v764_v15 = vpop.f32.mrf.mxu1 }
 0x7e1   :  { %v1798_v21 = vpop.f32.mrf.mxu1 }
 0x7e3   :  { %v777_v22 = vpop.f32.mrf.mxu1 }
 0x7e5   :  { %v1799_v23 = vpop.f32.mrf.mxu1 }
 0x7e7   :  { %v780_v24 = vpop.f32.mrf.mxu1 }
 0x7e9   :  { %v1252_v25 = vpop.f32.mrf.mxu1 }
 0x7ea   :  { %1260 = vrot.lane.b32.xlu0 %v1252_v25, %s1973_s19  ;;  %s1977_s19 = smov 127  }
 0x7eb   :  { %v1822_v19 = vpop.f32.mrf.mxu1 }
 0x7ed   :  { %v1255_v26 = vpop.f32.mrf.mxu1 }
 0x7ee   :  { %589 = vrot.lane.b32.xlu0 %v573_v63, %s1975_s1  ;;  %1264 = vrot.lane.b32.xlu1 %v1255_v26, %s1974_s20 }
 0x7ef   :  { %v1823_v17 = vpop.f32.mrf.mxu1 }
 0x7f2   :  { %593 = vrot.lane.b32.xlu0 %v575_v59, %s1975_s1  ;;  %591 = vrot.lane.b32.xlu1 %v574_v62, %s1975_s1 }
 0x7f6   :  { %597 = vrot.lane.b32.xlu0 %v577_v55, %s1975_s1  ;;  %595 = vrot.lane.b32.xlu1 %v576_v56, %s1975_s1 }
 0x7fa   :  { %601 = vrot.lane.b32.xlu0 %v579_v41, %s1975_s1  ;;  %599 = vrot.lane.b32.xlu1 %v578_v53, %s1975_s1 }
 0x7fe   :  { %603 = vrot.lane.b32.xlu1 %v580_v50, %s1975_s1  ;;  %v2366_v50 = vld [vmem:[%s2649_s2 + $0x48] ss:$0 sm:$0xff] }
 0x7ff   :  { %v765_v53 = vadd.f32 %v2366_v50, %v764_v15  ;;  %v770_v60 = vadd.f32 %v1794_v58, %v2366_v50  ;;  %v762_v63 = vadd.f32 %v2366_v50, %v761_v9  ;;  %v778_v20 = vadd.f32 %v2366_v50, %v777_v22 }
 0x800   :  { %v773_v31 = vadd.f32 %v1795_v13, %v2366_v50  ;;  %v786_v38 = vadd.f32 %v1798_v21, %v2366_v50  ;;  %v781_v0 = vadd.f32 %v2366_v50, %v780_v24 }
 0x801   :  { %v793_v62 = vmax.f32 %v765_v53, 0.0  ;;  %v794_v6 = vmax.f32 %v770_v60, 0.0  ;;  %v792_v27 = vmax.f32 %v762_v63, 0.0  ;;  %v796_v7 = vmax.f32 %v778_v20, 0.0 }
 0x802   :  { %v795_v2 = vmax.f32 %v773_v31, 0.0  ;;  %v798_v1 = vmax.f32 %v786_v38, 0.0 }
 0x85c   :  { %v1261_v54 = vpop.permute.xlu0 %1260 }
 0x860   :  { %v590_v57 = vpop.permute.xlu0 %589  ;;  %v1265_v49 = vpop.permute.xlu1 %1264 }
 0x861   :  { %v1267_v55 = vsel %vm219_vm2, %v1261_v54, %v1265_v49  ;;  %v613_v52 = vsel %vm219_vm2, %v590_v57, 0.0 }
 0x862   :  { %v1268_v56 = vpack.c.bf16 %v1267_v55, %v1267_v55  ;;  %614 = vadd.xlane.f32.xlu0 %v613_v52 }
 0x864   :  { %v594_v59 = vpop.permute.xlu0 %593  ;;  %1839 = vmatprep.subr.msk.bf16.mxu0 %vm227_vm3, %v1268_v56  ;;  %v592_v45 = vpop.permute.xlu1 %591  ;;  %v1282_v41 = vsel %vm227_vm3, %v1268_v56, 0 }
 0x865   :  { %1825 = vmatpush3.bf16.xpose.msra.mxu0 %v1282_v41  ;;  %v619_v51 = vsel %vm219_vm2, %v594_v59, 0.0  ;;  %v616_v47 = vsel %vm219_vm2, %v592_v45, 0.0 }
 0x866   :  { %620 = vadd.xlane.f32.xlu0 %v619_v51  ;;  %617 = vadd.xlane.f32.xlu1 %v616_v47 }
 0x868   :  { %v596_v14 = vpop.permute.xlu1 %595 }
 0x869   :  { %v622_v16 = vsel %vm219_vm2, %v596_v14, 0.0 }
 0x86c   :  { %1827 = vmatmul.mubr.msk.bf16.vlgmr.msra.gmra.mxu0 %vm227_vm3, %v1215_v30  ;;  %v600_v42 = vpop.permute.xlu1 %599 }
 0x86d   :  { %1830 = vmatprep.mubr.msk.bf16.mxu0 %vm227_vm3, %v1216_v12  ;;  %v797_v12 = vmax.f32 %v781_v0, 0.0  ;;  %v628_v39 = vsel %vm219_vm2, %v600_v42, 0.0 }
 0x870   :  { %v2414_v11 = vpop.permute.xlu1 %603 }
 0x874   :  { %1831 = vmatmul.mubr.msk.bf16.gmra.mxu0 %vm227_vm3, %v2301_v43  ;;  %v789_v43 = vadd.f32 %v1799_v23, %v2366_v50 }
 0x876   :  { %v799_v30 = vmax.f32 %v789_v43, 0.0 }
 0x877   :  { %822 = vrot.lane.b32.xlu1 %v793_v62, %s1976_s16 }
 0x87b   :  { %824 = vrot.lane.b32.xlu1 %v794_v6, %s1976_s16 }
 0x87c   :  { %820 = vrot.lane.b32.xlu0 %v792_v27, %s1976_s16 }
 0x87f   :  { %828 = vrot.lane.b32.xlu1 %v796_v7, %s1976_s16 }
 0x880   :  { %826 = vrot.lane.b32.xlu0 %v795_v2, %s1976_s16 }
 0x883   :  { %832 = vrot.lane.b32.xlu1 %v798_v1, %s1976_s16 }
 0x884   :  { %830 = vrot.lane.b32.xlu0 %v797_v12, %s1976_s16 }
 0x888   :  { %834 = vrot.lane.b32.xlu0 %v799_v30, %s1976_s16 }
 0x88c   :  { %1158 = vrot.lane.b32.xlu0 %v1142_v5, %s1975_s1  ;;  %v598_v5 = vpop.permute.xlu0 %597 }
 0x890   :  { %1160 = vrot.lane.b32.xlu0 %v1143_v18, %s1975_s1  ;;  %v625_v18 = vsel %vm219_vm2, %v598_v5, 0.0  ;;  %v602_v28 = vpop.permute.xlu0 %601 }
 0x894   :  { %1162 = vrot.lane.b32.xlu0 %v1144_v61, %s1975_s1 }
 0x898   :  { %1164 = vrot.lane.b32.xlu0 %v1145_v3, %s1975_s1 }
 0x89c   :  { %1166 = vrot.lane.b32.xlu0 %v1146_v48, %s1975_s1 }
 0x8a0   :  { %1168 = vrot.lane.b32.xlu0 %v1147_v44, %s1975_s1  ;;  %v631_v44 = vsel %vm219_vm2, %v602_v28, 0.0 }
 0x8a4   :  { %1170 = vrot.lane.b32.xlu0 %v1148_v40, %s1975_s1 }
 0x8a7   :  { %623 = vadd.xlane.f32.xlu1 %v622_v16 }
 0x8a8   :  { %1172 = vrot.lane.b32.xlu0 %v1149_v29, %s1975_s1 }
 0x8ab   :  { %626 = vadd.xlane.f32.xlu1 %v625_v18  ;;  %v634_v18 = vsel %vm219_vm2, %v2414_v11, 0.0 }
 0x8c7   :  { %629 = vadd.xlane.f32.xlu0 %v628_v39 }
 0x8cb   :  { %632 = vadd.xlane.f32.xlu0 %v631_v44 }
 0x8eb   :  { %v2416_v40 = vpop.xlane.xlu0 %614 }
 0x8ef   :  { %v2418_v46 = vpop.xlane.xlu0 %620  ;;  %v2420_v48 = vpop.xlane.xlu1 %617 }
 0x8f3   :  { %v823_v29 = vpop.permute.xlu1 %822  ;;  %v821_v3 = vpop.permute.xlu0 %820 }
 0x8f4   :  { %v845_v61 = vmul.f32 %v2425_v4, %v823_v29  ;;  %v844_v21 = vmul.f32 %v2425_v4, %v821_v3 }
 0x8f6   :  { %862 = vrot.lane.b32.xlu1 %v845_v61, %s1977_s19 }
 0x8f7   :  { %v825_v58 = vpop.permute.xlu1 %824  ;;  %v827_v13 = vpop.permute.xlu0 %826 }
 0x8f8   :  { %v846_v9 = vmul.f32 %v2425_v4, %v825_v58  ;;  %v847_v24 = vmul.f32 %v2425_v4, %v827_v13 }
 0x8fa   :  { %864 = vrot.lane.b32.xlu0 %v846_v9, %s1977_s19 }
 0x8fb   :  { %v829_v15 = vpop.permute.xlu1 %828  ;;  %v831_v22 = vpop.permute.xlu0 %830 }
 0x8fc   :  { %v848_v19 = vmul.f32 %v2425_v4, %v829_v15  ;;  %v849_v54 = vmul.f32 %v2425_v4, %v831_v22 }
 0x8fe   :  { %860 = vrot.lane.b32.xlu0 %v844_v21, %s1977_s19 }
 0x8ff   :  { %v833_v23 = vpop.permute.xlu1 %832  ;;  %v835_v26 = vpop.permute.xlu0 %834 }
 0x900   :  { %v850_v25 = vmul.f32 %v2425_v4, %v833_v23  ;;  %v851_v17 = vmul.f32 %v2425_v4, %v835_v26 }
 0x902   :  { %872 = vrot.lane.b32.xlu1 %v850_v25, %s1977_s19  ;;  %866 = vrot.lane.b32.xlu0 %v847_v24, %s1977_s19 }
 0x903   :  { %v1159_v12 = vpop.permute.xlu0 %1158 }
 0x904   :  { %v1182_v5 = vsel %vm219_vm2, %v1159_v12, 0.0 }
 0x906   :  { %868 = vrot.lane.b32.xlu0 %v848_v19, %s1977_s19 }
 0x907   :  { %v1161_v30 = vpop.permute.xlu0 %1160 }
 0x90a   :  { %874 = vrot.lane.b32.xlu0 %v851_v17, %s1977_s19 }
 0x90b   :  { %v1163_v14 = vpop.permute.xlu0 %1162 }
 0x90e   :  { %870 = vrot.lane.b32.xlu0 %v849_v54, %s1977_s19 }
 0x90f   :  { %v1165_v16 = vpop.permute.xlu0 %1164 }
 0x913   :  { %v1167_v42 = vpop.permute.xlu0 %1166 }
 0x92c   :  { %v1828_v57 = vpop.f32.mrf.mxu0 }
 0x92d   :  { %v1327_v49 = vadd.f32 %v1828_v57, %v2366_v50 }
 0x92e   :  { %v1318_v55 = vpop.f32.mrf.mxu0 }
 0x92f   :  { %v1351_v52 = vmax.f32 %v1327_v49, 0.0  ;;  %v1319_v56 = vadd.f32 %v2366_v50, %v1318_v55 }
 0x930   :  { %v1829_v59 = vpop.f32.mrf.mxu0  ;;  %v2466_v58 = vpop.xlane.xlu1 %623 }
 0x931   :  { %v1330_v45 = vadd.f32 %v1829_v59, %v2366_v50  ;;  %1377 = vrot.lane.b32.xlu1 %v1351_v52, %s1976_s16  ;;  %v1349_v51 = vmax.f32 %v1319_v56, 0.0 }
 0x932   :  { %v1321_v41 = vpop.f32.mrf.mxu0 }
 0x933   :  { %v1352_v47 = vmax.f32 %v1330_v45, 0.0  ;;  %v1322_v53 = vadd.f32 %v2366_v50, %v1321_v41 }
 0x934   :  { %v1832_v60 = vpop.f32.mrf.mxu0  ;;  %v2468_v13 = vpop.xlane.xlu1 %626 }
 0x935   :  { %v1343_v62 = vadd.f32 %v1832_v60, %v2366_v50  ;;  %1373 = vrot.lane.b32.xlu1 %v1349_v51, %s1976_s16  ;;  %1379 = vrot.lane.b32.xlu0 %v1352_v47, %s1976_s16  ;;  %v1350_v6 = vmax.f32 %v1322_v53, 0.0  ;;  %v1188_v53 = vsel %vm219_vm2, %v1163_v14, 0.0  ;;  %v1185_v60 = vsel %vm219_vm2, %v1161_v30, 0.0 }
 0x936   :  { %v1334_v63 = vpop.f32.mrf.mxu0 }
 0x937   :  { %v1355_v20 = vmax.f32 %v1343_v62, 0.0  ;;  %v1335_v27 = vadd.f32 %v2366_v50, %v1334_v63  ;;  %v1194_v62 = vsel %vm219_vm2, %v1167_v42, 0.0  ;;  %v1191_v63 = vsel %vm219_vm2, %v1165_v16, 0.0 }
 0x938   :  { %v1833_v31 = vpop.f32.mrf.mxu0 }
 0x939   :  { %v1346_v38 = vadd.f32 %v1833_v31, %v2366_v50  ;;  %1385 = vrot.lane.b32.xlu1 %v1355_v20, %s1976_s16  ;;  %1375 = vrot.lane.b32.xlu0 %v1350_v6, %s1976_s16  ;;  %v1353_v2 = vmax.f32 %v1335_v27, 0.0 }
 0x93a   :  { %v1337_v7 = vpop.f32.mrf.mxu0 }
 0x93b   :  { %v1356_v0 = vmax.f32 %v1346_v38, 0.0  ;;  %v1338_v1 = vadd.f32 %v2366_v50, %v1337_v7  ;;  %v1169_v50 = vpop.permute.xlu0 %1168 }
 0x93c   :  { %v1197_v20 = vsel %vm219_vm2, %v1169_v50, 0.0 }
 0x93d   :  { %1381 = vrot.lane.b32.xlu1 %v1353_v2, %s1976_s16  ;;  %1387 = vrot.lane.b32.xlu0 %v1356_v0, %s1976_s16  ;;  %v1354_v43 = vmax.f32 %v1338_v1, 0.0 }
 0x93f   :  { %v1171_v39 = vpop.permute.xlu0 %1170 }
 0x940   :  { %v1200_v6 = vsel %vm219_vm2, %v1171_v39, 0.0 }
 0x941   :  { %1383 = vrot.lane.b32.xlu0 %v1354_v43, %s1976_s16 }
 0x943   :  { %v1173_v28 = vpop.permute.xlu0 %1172 }
 0x944   :  { %v1203_v31 = vsel %vm219_vm2, %v1173_v28, 0.0 }
 0x950   :  { %v2462_v44 = vpop.xlane.xlu0 %629 }
 0x954   :  { %v2464_v29 = vpop.xlane.xlu0 %632 }
 0x960   :  { %1183 = vadd.xlane.f32.xlu0 %v1182_v5 }
 0x961   :  { %635 = vadd.xlane.f32.xlu1 %v634_v18 }
 0x968   :  { %v863_v21 = vpop.permute.xlu1 %862 }
 0x969   :  { %v887_v7 = vsel %vm219_vm2, %v863_v21, 0.0 }
 0x96c   :  { %v865_v3 = vpop.permute.xlu0 %864 }
 0x96d   :  { %v890_v38 = vsel %vm219_vm2, %v865_v3, 0.0 }
 0x970   :  { %v861_v61 = vpop.permute.xlu0 %860 }
 0x971   :  { %v884_v27 = vsel %vm219_vm2, %v861_v61, 0.0 }
 0x974   :  { %v867_v9 = vpop.permute.xlu0 %866  ;;  %v873_v11 = vpop.permute.xlu1 %872 }
 0x975   :  { %v893_v0 = vsel %vm219_vm2, %v867_v9, 0.0  ;;  %v902_v1 = vsel %vm219_vm2, %v873_v11, 0.0 }
 0x978   :  { %v869_v15 = vpop.permute.xlu0 %868 }
 0x979   :  { %v896_v2 = vsel %vm219_vm2, %v869_v15, 0.0 }
 0x97c   :  { %v875_v22 = vpop.permute.xlu0 %874 }
 0x97d   :  { %v905_v12 = vsel %vm219_vm2, %v875_v22, 0.0 }
 0x980   :  { %v871_v23 = vpop.permute.xlu0 %870 }
 0x981   :  { %v899_v43 = vsel %vm219_vm2, %v871_v23, 0.0 }
 0x9a3   :  { %v1378_v24 = vpop.permute.xlu1 %1377 }
 0x9a4   :  { %v1399_v25 = vmul.f32 %v2425_v4, %v1378_v24 }
 0x9a6   :  { %1417 = vrot.lane.b32.xlu1 %v1399_v25, %s1977_s19 }
 0x9a7   :  { %v1374_v19 = vpop.permute.xlu1 %1373  ;;  %v1380_v26 = vpop.permute.xlu0 %1379 }
 0x9a8   :  { %v1397_v17 = vmul.f32 %v2425_v4, %v1374_v19  ;;  %v1400_v54 = vmul.f32 %v2425_v4, %v1380_v26 }
 0x9aa   :  { %1413 = vrot.lane.b32.xlu1 %v1397_v17, %s1977_s19  ;;  %1419 = vrot.lane.b32.xlu0 %v1400_v54, %s1977_s19  ;;  %v637_v54 = vmul.f32 0.125, %v2416_v40  ;;  %v641_v40 = vmul.f32 0.125, %v2468_v13 }
 0x9ab   :  { %v1386_v57 = vpop.permute.xlu1 %1385  ;;  %v1376_v49 = vpop.permute.xlu0 %1375 }
 0x9ac   :  { %v1403_v55 = vmul.f32 %v2425_v4, %v1386_v57  ;;  %v1398_v52 = vmul.f32 %v2425_v4, %v1376_v49 }
 0x9ae   :  { %1425 = vrot.lane.b32.xlu1 %v1403_v55, %s1977_s19  ;;  %1415 = vrot.lane.b32.xlu0 %v1398_v52, %s1977_s19  ;;  %v639_v55 = vmul.f32 0.125, %v2418_v46  ;;  %v804_v52 = vmul.f32 %v2425_v4, %v637_v54  ;;  %v640_v46 = vmul.f32 0.125, %v2466_v58 }
 0x9af   :  { %v1382_v56 = vpop.permute.xlu1 %1381  ;;  %v1388_v59 = vpop.permute.xlu0 %1387 }
 0x9b0   :  { %v1401_v45 = vmul.f32 %v2425_v4, %v1382_v56  ;;  %v1404_v41 = vmul.f32 %v2425_v4, %v1388_v59  ;;  %v638_v56 = vmul.f32 0.125, %v2420_v48  ;;  %v2532_v59 = vld [vmem:[%s2649_s2 + $0x58] ss:$0 sm:$0xff]  ;;  %v2543_v48 = vld [vmem:[%s2649_s2 + $0x60] ss:$0 sm:$0xff]  ;;  %s1978_s2 = smov [#allocation5]  }
 0x9b1   :  { %s1618_s25 = sshll.u32 %s1978_s2, 4  ;;  %s1619_s25 = int_to_ptr.vmem [resolvable:$true] %s1618_s25 }
 0x9b2   :  { %1421 = vrot.lane.b32.xlu1 %v1401_v45, %s1977_s19  ;;  %1427 = vrot.lane.b32.xlu0 %v1404_v41, %s1977_s19  ;;  %s1944_s26 = scalar_lea.vmem %s1619_s25, 1024  ;;  %p1949_p6 = scmp.lt.s32.totalorder %s1619_s25, %s1619_s25 }
 0x9b3   :  { %v1384_v51 = vpop.permute.xlu0 %1383  ;;  %p1945_p5 = scmp.ne.s32.totalorder %s1619_s25, %s1944_s26  ;;  %p1950_p7 = scmp.lt.s32.totalorder %s1944_s26, %s1944_s26 }
 0x9b4   :  { %v1402_v47 = vmul.f32 %v2425_v4, %v1384_v51 }
 0x9b5   :  { %p1951_p8 = por %p1950_p7, %p1949_p6 }
 0x9b6   :  { %1423 = vrot.lane.b32.xlu0 %v1402_v47, %s1977_s19 }
 0x9b7   :  { %p1952_p9 = pnand %p1951_p8, %p1945_p5 }
 0x9d5   :  { %1189 = vadd.xlane.f32.xlu0 %v1188_v53  ;;  %v806_v53 = vmul.f32 %v2425_v4, %v639_v55 }
 0x9d6   :  { %1186 = vadd.xlane.f32.xlu1 %v1185_v60 }
 0x9d9   :  { %1195 = vadd.xlane.f32.xlu0 %v1194_v62  ;;  %v805_v62 = vmul.f32 %v2425_v4, %v638_v56 }
 0x9da   :  { %1192 = vadd.xlane.f32.xlu1 %v1191_v63 }
 0x9dd   :  { %1201 = vadd.xlane.f32.xlu0 %v1200_v6 }
 0x9de   :  { %1198 = vadd.xlane.f32.xlu1 %v1197_v20 }
 0x9e1   :  { %885 = vadd.xlane.f32.xlu0 %v884_v27  ;;  %v2546_v27 = vstv %s1630_s21 }
 0x9e2   :  { %1204 = vadd.xlane.f32.xlu1 %v1203_v31  ;;  %v643_v31 = vmul.f32 0.125, %v2464_v29 }
 0x9e5   :  { %891 = vadd.xlane.f32.xlu0 %v890_v38 }
 0x9e6   :  { %888 = vadd.xlane.f32.xlu1 %v887_v7  ;;  %v808_v7 = vmul.f32 %v2425_v4, %v641_v40 }
 0x9e9   :  { %897 = vadd.xlane.f32.xlu0 %v896_v2  ;;  %v2503_v14 = vpop.xlane.xlu0 %1183  ;;  %v642_v2 = vmul.f32 0.125, %v2462_v44 }
 0x9ea   :  { %894 = vadd.xlane.f32.xlu1 %v893_v0  ;;  %v2501_v30 = vpop.xlane.xlu1 %635 }
 0x9eb   :  { %v644_v44 = vmul.f32 0.125, %v2501_v30 }
 0x9ed   :  { %903 = vadd.xlane.f32.xlu0 %v902_v1 }
 0x9ee   :  { %900 = vadd.xlane.f32.xlu1 %v899_v43  ;;  %v807_v43 = vmul.f32 %v2425_v4, %v640_v46 }
 0x9f2   :  { %906 = vadd.xlane.f32.xlu1 %v905_v12 }
 0xa18   :  { %v1418_v16 = vpop.permute.xlu1 %1417 }
 0xa19   :  { %v1443_v5 = vsel %vm219_vm2, %v1418_v16, 0.0 }
 0xa1a   :  { %1444 = vadd.xlane.f32.xlu0 %v1443_v5 }
 0xa1c   :  { %v1414_v18 = vpop.permute.xlu1 %1413  ;;  %v1420_v42 = vpop.permute.xlu0 %1419 }
 0xa1d   :  { %v1437_v50 = vsel %vm219_vm2, %v1414_v18, 0.0  ;;  %v1446_v39 = vsel %vm219_vm2, %v1420_v42, 0.0 }
 0xa1e   :  { %1438 = vadd.xlane.f32.xlu0 %v1437_v50  ;;  %1447 = vadd.xlane.f32.xlu1 %v1446_v39 }
 0xa20   :  { %v1426_v28 = vpop.permute.xlu1 %1425  ;;  %v1416_v3 = vpop.permute.xlu0 %1415 }
 0xa21   :  { %v1440_v61 = vsel %vm219_vm2, %v1416_v3, 0.0  ;;  %v1455_v11 = vsel %vm219_vm2, %v1426_v28, 0.0  ;;  %v810_v3 = vmul.f32 %v2425_v4, %v643_v31 }
 0xa22   :  { %1441 = vadd.xlane.f32.xlu1 %v1440_v61 }
 0xa24   :  { %v1422_v9 = vpop.permute.xlu1 %1421  ;;  %v1428_v15 = vpop.permute.xlu0 %1427 }
 0xa25   :  { %v1449_v21 = vsel %vm219_vm2, %v1422_v9, 0.0  ;;  %v1458_v24 = vsel %vm219_vm2, %v1428_v15, 0.0 }
 0xa26   :  { %1450 = vadd.xlane.f32.xlu0 %v1449_v21  ;;  %v809_v21 = vmul.f32 %v2425_v4, %v642_v2 }
 0xa28   :  { %v1424_v22 = vpop.permute.xlu0 %1423 }
 0xa29   :  { %v1452_v23 = vsel %vm219_vm2, %v1424_v22, 0.0 }
 0xa2a   :  { %1456 = vadd.xlane.f32.xlu0 %v1455_v11  ;;  %1453 = vadd.xlane.f32.xlu1 %v1452_v23 }
 0xa2e   :  { %1459 = vadd.xlane.f32.xlu1 %v1458_v24 }
 0xa5e   :  { %v2513_v25 = vpop.xlane.xlu0 %1189 }
 0xa5f   :  { %v2515_v19 = vpop.xlane.xlu1 %1186 }
 0xa62   :  { %v2517_v26 = vpop.xlane.xlu0 %1195 }
 0xa63   :  { %v2519_v17 = vpop.xlane.xlu1 %1192 }
 0xa66   :  { %v2522_v57 = vpop.xlane.xlu0 %1201 }
 0xa67   :  { %v2524_v49 = vpop.xlane.xlu1 %1198 }
 0xa6a   :  { %v886_v45 = vpop.xlane.xlu0 %885 }
 0xa6b   :  { %v908_v41 = vadd.f32 %v886_v45, %v804_v52  ;;  %v2534_v51 = vpop.xlane.xlu1 %1204 }
 0xa6d   :  { %v920_v47 = vadd.f32 %v2532_v59, %v908_v41 }
 0xa6e   :  { %v892_v60 = vpop.xlane.xlu0 %891 }
 0xa6f   :  { %v928_v63 = vmax.f32 %v920_v47, 0.0  ;;  %v910_v6 = vadd.f32 %v892_v60, %v806_v53  ;;  %v889_v20 = vpop.xlane.xlu1 %888  ;;  %v811_v53 = vmul.f32 %v2425_v4, %v644_v44 }
 0xa70   :  { %v909_v13 = vadd.f32 %v889_v20, %v805_v62 }
 0xa71   :  { %v940_v38 = vmul.f32 %v2543_v48, %v928_v63  ;;  %v922_v58 = vadd.f32 %v2532_v59, %v910_v6 }
 0xa72   :  { %v921_v0 = vadd.f32 %v2532_v59, %v909_v13  ;;  %v898_v1 = vpop.xlane.xlu0 %897 }
 0xa73   :  { %v949_v12 = vadd.f32 %v2546_v27, %v940_v38  ;;  %v930_v16 = vmax.f32 %v922_v58, 0.0  ;;  %v912_v5 = vadd.f32 %v898_v1, %v808_v7  ;;  %v895_v18 = vpop.xlane.xlu1 %894 }
 0xa74   :  { %v929_v42 = vmax.f32 %v921_v0, 0.0  ;;  %v911_v29 = vadd.f32 %v895_v18, %v807_v43 }
 0xa75   :  { %v1659_v50 = vmul.f32 -1.442695, %v949_v12  ;;  %v942_v39 = vmul.f32 %v2543_v48, %v930_v16  ;;  %v924_v28 = vadd.f32 %v2532_v59, %v912_v5 }
 0xa76   :  { %v941_v61 = vmul.f32 %v2543_v48, %v929_v42  ;;  %v923_v9 = vadd.f32 %v2532_v59, %v911_v29  ;;  %v904_v15 = vpop.xlane.xlu0 %903 }
 0xa77   :  { %1868 = vpow2.f32 %v1659_v50  ;;  %v951_v22 = vadd.f32 %v2546_v27, %v942_v39  ;;  %v932_v11 = vmax.f32 %v924_v28, 0.0  ;;  %v914_v23 = vadd.f32 %v904_v15, %v810_v3  ;;  %v901_v24 = vpop.xlane.xlu1 %900 }
 0xa78   :  { %v950_v54 = vadd.f32 %v2546_v27, %v941_v61  ;;  %v931_v55 = vmax.f32 %v923_v9, 0.0  ;;  %v913_v52 = vadd.f32 %v901_v24, %v809_v21 }
 0xa79   :  { %v1661_v56 = vmul.f32 -1.442695, %v951_v22  ;;  %v944_v30 = vmul.f32 %v2543_v48, %v932_v11  ;;  %v926_v45 = vadd.f32 %v2532_v59, %v914_v23 }
 0xa7a   :  { %v1660_v41 = vmul.f32 -1.442695, %v950_v54  ;;  %v943_v40 = vmul.f32 %v2543_v48, %v931_v55  ;;  %v925_v47 = vadd.f32 %v2532_v59, %v913_v52 }
 0xa7b   :  { %1870 = vpow2.f32 %v1661_v56  ;;  %v953_v46 = vadd.f32 %v2546_v27, %v944_v30  ;;  %v934_v60 = vmax.f32 %v926_v45, 0.0  ;;  %v907_v62 = vpop.xlane.xlu1 %906  ;;  %v1208_v45 = vmul.f32 0.125, %v2513_v25 }
 0xa7c   :  { %1872 = vpow2.f32 %v1660_v41  ;;  %v952_v63 = vadd.f32 %v2546_v27, %v943_v40  ;;  %v933_v6 = vmax.f32 %v925_v47, 0.0  ;;  %v915_v20 = vadd.f32 %v907_v62, %v811_v53 }
 0xa7d   :  { %v1663_v13 = vmul.f32 -1.442695, %v953_v46  ;;  %v946_v31 = vmul.f32 %v2543_v48, %v934_v60  ;;  %v1206_v47 = vmul.f32 0.125, %v2503_v14  ;;  %v1209_v53 = vmul.f32 0.125, %v2519_v17 }
 0xa7e   :  { %v1662_v38 = vmul.f32 -1.442695, %v952_v63  ;;  %v945_v58 = vmul.f32 %v2543_v48, %v933_v6  ;;  %v927_v7 = vadd.f32 %v2532_v59, %v915_v20  ;;  %v1359_v46 = vmul.f32 %v2425_v4, %v1208_v45 }
 0xa7f   :  { %1874 = vpow2.f32 %v1663_v13  ;;  %v955_v2 = vadd.f32 %v2546_v27, %v946_v31  ;;  %v1207_v20 = vmul.f32 0.125, %v2515_v19  ;;  %v1360_v13 = vmul.f32 %v2425_v4, %v1209_v53 }
 0xa80   :  { %1876 = vpow2.f32 %v1662_v38  ;;  %v954_v0 = vadd.f32 %v2546_v27, %v945_v58  ;;  %v935_v1 = vmax.f32 %v927_v7, 0.0  ;;  %v1357_v14 = vmul.f32 %v2425_v4, %v1206_v47 }
 0xa81   :  { %v1665_v43 = vmul.f32 -1.442695, %v955_v2  ;;  %v1358_v19 = vmul.f32 %v2425_v4, %v1207_v20 }
 0xa82   :  { %v1664_v12 = vmul.f32 -1.442695, %v954_v0  ;;  %v947_v16 = vmul.f32 %v2543_v48, %v935_v1 }
 0xa83   :  { %1878 = vpow2.f32 %v1665_v43  ;;  %v1210_v43 = vmul.f32 0.125, %v2517_v26 }
 0xa84   :  { %v1869_v5 = vpop.eup %1868  ;;  %1880 = vpow2.f32 %v1664_v12  ;;  %v956_v18 = vadd.f32 %v2546_v27, %v947_v16 }
 0xa85   :  { %v981_v42 = vadd.f32 1.0, %v1869_v5 }
 0xa86   :  { %v1666_v29 = vmul.f32 -1.442695, %v956_v18 }
 0xa87   :  { %1882 = vrcp.f32 %v981_v42 }
 0xa88   :  { %v1871_v50 = vpop.eup %1870  ;;  %1884 = vpow2.f32 %v1666_v29  ;;  %v1212_v29 = vmul.f32 0.125, %v2522_v57 }
 0xa89   :  { %v1873_v39 = vpop.eup %1872  ;;  %v983_v3 = vadd.f32 1.0, %v1871_v50  ;;  %v1211_v50 = vmul.f32 0.125, %v2524_v49 }
 0xa8a   :  { %v982_v28 = vadd.f32 1.0, %v1873_v39  ;;  %v1363_v49 = vmul.f32 %v2425_v4, %v1212_v29 }
 0xa8b   :  { %v1362_v57 = vmul.f32 %v2425_v4, %v1211_v50 }
 0xa8c   :  { %v1875_v44 = vpop.eup %1874  ;;  %1886 = vrcp.f32 %v982_v28 }
 0xa8d   :  { %v1877_v61 = vpop.eup %1876  ;;  %1888 = vrcp.f32 %v983_v3  ;;  %v985_v15 = vadd.f32 1.0, %v1875_v44 }
 0xa8e   :  { %v984_v9 = vadd.f32 1.0, %v1877_v61  ;;  %v1361_v61 = vmul.f32 %v2425_v4, %v1210_v43 }
 0xa90   :  { %v1879_v21 = vpop.eup %1878  ;;  %1890 = vrcp.f32 %v984_v9 }
 0xa91   :  { %v1881_v22 = vpop.eup %1880  ;;  %1892 = vrcp.f32 %v985_v15  ;;  %v987_v23 = vadd.f32 1.0, %v1879_v21 }
 0xa92   :  { %v986_v11 = vadd.f32 1.0, %v1881_v22 }
 0xa94   :  { %v1883_v24 = vpop.eup %1882  ;;  %1894 = vrcp.f32 %v986_v11  ;;  %v1213_v11 = vmul.f32 0.125, %v2534_v51 }
 0xa95   :  { %v1885_v54 = vpop.eup %1884  ;;  %1007 = vperm.xlu0 %1852, %v1883_v24   ;;  %1896 = vrcp.f32 %v987_v23 }
 0xa96   :  { %v988_v55 = vadd.f32 1.0, %v1885_v54 }
 0xa98   :  { %1898 = vrcp.f32 %v988_v55 }
 0xa99   :  { %v1887_v52 = vpop.eup %1886 }
 0xa9a   :  { %1012 = vperm.xlu1 %1853, %v1887_v52   ;;  %v1889_v56 = vpop.eup %1888 }
 0xa9d   :  { %v1891_v30 = vpop.eup %1890 }
 0xa9e   :  { %1022 = vperm.xlu0 %1852, %v1891_v30   ;;  %1017 = vperm.xlu1 %1853, %v1889_v56   ;;  %v1893_v41 = vpop.eup %1892 }
 0xaa1   :  { %v1895_v40 = vpop.eup %1894 }
 0xaa2   :  { %1032 = vperm.xlu0 %1852, %v1895_v40   ;;  %1027 = vperm.xlu1 %1853, %v1893_v41   ;;  %v1897_v62 = vpop.eup %1896 }
 0xaa3   :  { %v1445_v60 = vpop.xlane.xlu0 %1444 }
 0xaa4   :  { %v1463_v63 = vadd.f32 %v1445_v60, %v1359_v46  ;;  %v1364_v46 = vmul.f32 %v2425_v4, %v1213_v11 }
 0xaa5   :  { %v1899_v6 = vpop.eup %1898 }
 0xaa6   :  { %v1471_v25 = vadd.f32 %v2532_v59, %v1463_v63  ;;  %1042 = vperm.xlu0 %1852, %v1899_v6   ;;  %1037 = vperm.xlu1 %1853, %v1897_v62  }
 0xaa7   :  { %v1448_v31 = vpop.xlane.xlu1 %1447  ;;  %v1439_v17 = vpop.xlane.xlu0 %1438 }
 0xaa8   :  { %v1479_v38 = vmax.f32 %v1471_v25, 0.0  ;;  %v1464_v58 = vadd.f32 %v1448_v31, %v1360_v13  ;;  %v1461_v7 = vadd.f32 %v1439_v17, %v1357_v14 }
 0xaaa   :  { %v1487_v2 = vmul.f32 %v2543_v48, %v1479_v38  ;;  %v1472_v0 = vadd.f32 %v2532_v59, %v1464_v58  ;;  %v1469_v1 = vadd.f32 %v2532_v59, %v1461_v7 }
 0xaab   :  { %v1442_v12 = vpop.xlane.xlu1 %1441 }
 0xaac   :  { %v1495_v16 = vadd.f32 %v1487_v2, %v2546_v27  ;;  %v1480_v5 = vmax.f32 %v1472_v0, 0.0  ;;  %v1477_v18 = vmax.f32 %v1469_v1, 0.0  ;;  %v1462_v42 = vadd.f32 %v1442_v12, %v1358_v19 }
 0xaae   :  { %v1678_v39 = vmul.f32 -1.442695, %v1495_v16  ;;  %v1488_v28 = vmul.f32 %v2543_v48, %v1480_v5  ;;  %v1485_v3 = vmul.f32 %v2543_v48, %v1477_v18  ;;  %v1470_v44 = vadd.f32 %v2532_v59, %v1462_v42 }
 0xaaf   :  { %v1451_v26 = vpop.xlane.xlu0 %1450 }
 0xab0   :  { %1900 = vpow2.f32 %v1678_v39  ;;  %v1496_v9 = vadd.f32 %v1488_v28, %v2546_v27  ;;  %v1493_v15 = vadd.f32 %v1485_v3, %v2546_v27  ;;  %v1478_v21 = vmax.f32 %v1470_v44, 0.0 }
 0xab1   :  { %v1465_v22 = vadd.f32 %v1451_v26, %v1361_v61 }
 0xab2   :  { %v1679_v23 = vmul.f32 -1.442695, %v1496_v9  ;;  %v1676_v24 = vmul.f32 -1.442695, %v1493_v15  ;;  %v1486_v54 = vmul.f32 %v2543_v48, %v1478_v21 }
 0xab3   :  { %v1473_v55 = vadd.f32 %v2532_v59, %v1465_v22  ;;  %v1454_v52 = vpop.xlane.xlu1 %1453  ;;  %v1457_v56 = vpop.xlane.xlu0 %1456 }
 0xab4   :  { %1902 = vpow2.f32 %v1679_v23  ;;  %v1494_v30 = vadd.f32 %v1486_v54, %v2546_v27  ;;  %v1466_v45 = vadd.f32 %v1454_v52, %v1362_v57  ;;  %v1467_v41 = vadd.f32 %v1457_v56, %v1363_v49 }
 0xab5   :  { %1904 = vpow2.f32 %v1676_v24  ;;  %v1481_v40 = vmax.f32 %v1473_v55, 0.0 }
 0xab6   :  { %v1677_v47 = vmul.f32 -1.442695, %v1494_v30  ;;  %v1474_v53 = vadd.f32 %v2532_v59, %v1466_v45  ;;  %v1475_v51 = vadd.f32 %v2532_v59, %v1467_v41 }
 0xab7   :  { %v1489_v60 = vmul.f32 %v2543_v48, %v1481_v40  ;;  %v1460_v62 = vpop.xlane.xlu1 %1459 }
 0xab8   :  { %1906 = vpow2.f32 %v1677_v47  ;;  %v1482_v63 = vmax.f32 %v1474_v53, 0.0  ;;  %v1483_v6 = vmax.f32 %v1475_v51, 0.0  ;;  %v1468_v20 = vadd.f32 %v1460_v62, %v1364_v46 }
 0xab9   :  { %v1497_v25 = vadd.f32 %v1489_v60, %v2546_v27 }
 0xaba   :  { %v1490_v13 = vmul.f32 %v2543_v48, %v1482_v63  ;;  %v1491_v14 = vmul.f32 %v2543_v48, %v1483_v6  ;;  %v1476_v31 = vadd.f32 %v2532_v59, %v1468_v20 }
 0xabb   :  { %v1680_v17 = vmul.f32 -1.442695, %v1497_v25 }
 0xabc   :  { %v1498_v38 = vadd.f32 %v1490_v13, %v2546_v27  ;;  %v1499_v4 = vadd.f32 %v1491_v14, %v2546_v27  ;;  %v1484_v58 = vmax.f32 %v1476_v31, 0.0 }
 0xabd   :  { %v1901_v7 = vpop.eup %1900  ;;  %1908 = vpow2.f32 %v1680_v17 }
 0xabe   :  { %v1527_v2 = vadd.f32 1.0, %v1901_v7  ;;  %v1681_v0 = vmul.f32 -1.442695, %v1498_v38  ;;  %v1682_v1 = vmul.f32 -1.442695, %v1499_v4  ;;  %v1492_v19 = vmul.f32 %v2543_v48, %v1484_v58 }
 0xac0   :  { %1910 = vrcp.f32 %v1527_v2  ;;  %v1500_v43 = vadd.f32 %v1492_v19, %v2546_v27 }
 0xac1   :  { %v1903_v12 = vpop.eup %1902  ;;  %1912 = vpow2.f32 %v1681_v0 }
 0xac2   :  { %v1905_v16 = vpop.eup %1904  ;;  %v1528_v59 = vadd.f32 1.0, %v1903_v12  ;;  %1914 = vpow2.f32 %v1682_v1  ;;  %v1683_v5 = vmul.f32 -1.442695, %v1500_v43 }
 0xac3   :  { %v1525_v18 = vadd.f32 1.0, %v1905_v16 }
 0xac4   :  { %1916 = vrcp.f32 %v1528_v59 }
 0xac5   :  { %v1907_v42 = vpop.eup %1906  ;;  %1918 = vrcp.f32 %v1525_v18 }
 0xac6   :  { %v1526_v29 = vadd.f32 1.0, %v1907_v42  ;;  %1920 = vpow2.f32 %v1683_v5 }
 0xac8   :  { %1922 = vrcp.f32 %v1526_v29 }
 0xaca   :  { %v1909_v50 = vpop.eup %1908 }
 0xacb   :  { %v1529_v39 = vadd.f32 1.0, %v1909_v50 }
 0xacd   :  { %v1911_v28 = vpop.eup %1910  ;;  %1924 = vrcp.f32 %v1529_v39 }
 0xace   :  { %v1913_v48 = vpop.eup %1912  ;;  %1561 = vperm.xlu1 %1853, %v1911_v28  }
 0xacf   :  { %v1915_v27 = vpop.eup %1914  ;;  %v1530_v3 = vadd.f32 1.0, %v1913_v48 }
 0xad0   :  { %v1531_v44 = vadd.f32 1.0, %v1915_v27 }
 0xad1   :  { %v1917_v61 = vpop.eup %1916  ;;  %1926 = vrcp.f32 %v1530_v3 }
 0xad2   :  { %v1919_v26 = vpop.eup %1918  ;;  %1928 = vrcp.f32 %v1531_v44  ;;  %1566 = vperm.xlu0 %1852, %v1917_v61  }
 0xad3   :  { %v1921_v9 = vpop.eup %1920  ;;  %1551 = vperm.xlu1 %1853, %v1919_v26  }
 0xad4   :  { %v1532_v15 = vadd.f32 1.0, %v1921_v9 }
 0xad5   :  { %v1923_v21 = vpop.eup %1922 }
 0xad6   :  { %1930 = vrcp.f32 %v1532_v15  ;;  %1556 = vperm.xlu0 %1852, %v1923_v21  }
 0xada   :  { %v1925_v22 = vpop.eup %1924 }
 0xadb   :  { %1571 = vperm.xlu1 %1853, %v1925_v22  }
 0xade   :  { %v1927_v57 = vpop.eup %1926 }
 0xadf   :  { %v1929_v49 = vpop.eup %1928  ;;  %1576 = vperm.xlu0 %1852, %v1927_v57  }
 0xae0   :  { %1581 = vperm.xlu1 %1853, %v1929_v49  }
 0xae3   :  { %v1931_v11 = vpop.eup %1930 }
 0xae4   :  { %1586 = vperm.xlu0 %1852, %v1931_v11  }
 0xb10   :  { %v1008_v24 = vpop.permute.xlu0 %1007 }
 0xb11   :  { %v1045_v63 = vmul.f32 %v1008_v24, %v2156_v34 }
 0xb15   :  { %v1013_v23 = vpop.permute.xlu1 %1012 }
 0xb19   :  { %v1018_v54 = vpop.permute.xlu1 %1017  ;;  %v1023_v55 = vpop.permute.xlu0 %1022 }
 0xb1a   :  { %v1047_v40 = vmul.f32 %v1018_v54, %v2150_v32  ;;  %v1048_v46 = vmul.f32 %v1023_v55, %v2153_v33 }
 0xb1d   :  { %v1028_v52 = vpop.permute.xlu1 %1027  ;;  %v1033_v56 = vpop.permute.xlu0 %1032 }
 0xb1e   :  { %v1050_v58 = vmul.f32 %v1033_v56, %v2165_v37 }
 0xb21   :  { %v1038_v30 = vpop.permute.xlu1 %1037  ;;  %v1043_v45 = vpop.permute.xlu0 %1042 }
 0xb22   :  { %v1051_v0 = vmul.f32 %v1038_v30, %v2172_v8  ;;  %v1052_v43 = vmul.f32 %v1043_v45, %v2175_v10 }
 0xb49   :  { %v1562_v41 = vpop.permute.xlu1 %1561 }
 0xb4a   :  { %v1591_v47 = vmul.f32 %v1562_v41, %v2150_v32  ;;  %v1046_v32 = vmul.f32 %v1013_v23, %v2159_v35 }
 0xb4c   :  { %v1599_v53 = vsel %vm92_vm0, %v1047_v40, %v1591_v47 }
 0xb4d   :  { %1607 = vst [vmem:[#allocation5 + $0x10] sm:$0xff] %v1599_v53  ;;  %v1567_v51 = vpop.permute.xlu0 %1566 }
 0xb4e   :  { %v1552_v60 = vpop.permute.xlu1 %1551  ;;  %v1592_v62 = vmul.f32 %v1567_v51, %v2153_v33  ;;  %v1049_v33 = vmul.f32 %v1028_v52, %v2162_v36 }
 0xb4f   :  { %v1589_v6 = vmul.f32 %v1552_v60, %v2156_v34 }
 0xb50   :  { %v1600_v20 = vsel %vm92_vm0, %v1048_v46, %v1592_v62 }
 0xb51   :  { %v1597_v25 = vsel %vm92_vm0, %v1045_v63, %v1589_v6  ;;  %1608 = vst [vmem:[#allocation5 + $0x18] sm:$0xff] %v1600_v20  ;;  %v1557_v13 = vpop.permute.xlu0 %1556 }
 0xb52   :  { %1605 = vst [vmem:[#allocation5] sm:$0xff] %v1597_v25  ;;  %v1590_v14 = vmul.f32 %v1557_v13, %v2159_v35 }
 0xb54   :  { %v1598_v31 = vsel %vm92_vm0, %v1046_v32, %v1590_v14 }
 0xb55   :  { %1606 = vst [vmem:[#allocation5 + $0x8] sm:$0xff] %v1598_v31 }
 0xb56   :  { %v1572_v17 = vpop.permute.xlu1 %1571 }
 0xb57   :  { %v1593_v38 = vmul.f32 %v1572_v17, %v2162_v36 }
 0xb59   :  { %v1601_v34 = vsel %vm92_vm0, %v1049_v33, %v1593_v38 }
 0xb5a   :  { %1609 = vst [vmem:[#allocation5 + $0x20] sm:$0xff] %v1601_v34  ;;  %v1577_v4 = vpop.permute.xlu0 %1576 }
 0xb5b   :  { %v1582_v7 = vpop.permute.xlu1 %1581  ;;  %v1594_v2 = vmul.f32 %v1577_v4, %v2165_v37 }
 0xb5c   :  { %v1595_v35 = vmul.f32 %v1582_v7, %v2172_v8 }
 0xb5d   :  { %v1602_v1 = vsel %vm92_vm0, %v1050_v58, %v1594_v2 }
 0xb5e   :  { %v1603_v19 = vsel %vm92_vm0, %v1051_v0, %v1595_v35  ;;  %1610 = vst [vmem:[#allocation5 + $0x28] sm:$0xff] %v1602_v1 }
 0xb5f   :  { %1611 = vst [vmem:[#allocation5 + $0x30] sm:$0xff] %v1603_v19  ;;  %v1587_v36 = vpop.permute.xlu0 %1586 }
 0xb60   :  { %v1596_v12 = vmul.f32 %v1587_v36, %v2175_v10 }
 0xb62   :  { %v1604_v37 = vsel %vm92_vm0, %v1052_v43, %v1596_v12 }
 0xb63   :  { %1612 = vst [vmem:[#allocation5 + $0x38] sm:$0xff] %v1604_v37 }
 0xb64   :  { %1955 = shalt.err (!%p1952_p9)
}
 0xb65   :  { %s1979_s27 = smov 128  }
 0xb66   :  { %1624 = dma.vmem_to_hbm [thread:$0]  %s1619_s25, 1024, %s2651_s4, [#allocation3], %s1979_s27, %s1979_s27, %s1974_s20  }
 0xb67   :  { %1966 = dma.done.wait [#allocation3], 1024  }
 0xb68   :  { %1967 = vsyncadd [#allocation3], 4294966272 }
 0xb69   :  { %1628 = vsyncpa [#allocation3], 1 }
 0xb6a   :  { %1629 = vsyncpa [#allocation4], 1 }

</bundles_post_ra>
